<compile_context>
chip_gen: v7x
topology: tpu7x:2x2x1
jax: 0.10.0
libtpu: 0.0.40
codegen_flags: <defaults>
</compile_context>

<pallas_src>
import functools

import jax
import jax.numpy as jnp
from jax.experimental import pallas as pl
from jax.experimental.pallas import tpu as pltpu

MAX_TM = 512  # lane tile over M = N*Ho*Wo

# bf16 matmul inputs only on TPU (MXU-native); f32 elsewhere so interpret/CPU runs clean.
_ON_TPU = jax.default_backend() == "tpu"
_DOT_DTYPE = jnp.bfloat16 if _ON_TPU else jnp.float32


# ---------------------------------------------------------------------------
# Pallas kernels
# ---------------------------------------------------------------------------
def _conv_kernel_plain(w_ref, p_ref, o_ref, *, slope):
    """One M-tile of (Cout, K) @ (K, TM), optional fused LeakyReLU epilogue."""
    y = jnp.dot(w_ref[...], p_ref[...], preferred_element_type=jnp.float32)
    if slope is not None:
        y = jnp.where(y >= 0, y, slope * y)
    o_ref[...] = y


def _conv_kernel_stats(w_ref, p_ref, o_ref, sum_ref, sq_ref):
    """Conv matmul tile + per-channel sum / sum^2 for training-mode BatchNorm.

    NOTE: the (Cout, 1) accumulators are grid-resident, so the single grid axis MUST
    stay "arbitrary" (sequential).  Switching to "parallel" (e.g. v7x megacore) would
    require restructuring into per-tile partial sums first.
    """
    i = pl.program_id(0)
    y = jnp.dot(w_ref[...], p_ref[...], preferred_element_type=jnp.float32)
    o_ref[...] = y

    @pl.when(i == 0)
    def _():
        sum_ref[...] = jnp.zeros_like(sum_ref)
        sq_ref[...] = jnp.zeros_like(sq_ref)

    sum_ref[...] += jnp.sum(y, axis=1, keepdims=True)
    sq_ref[...] += jnp.sum(y * y, axis=1, keepdims=True)


def _heads_kernel(x_ref, wd_ref, bd_ref, wa_ref, ba_ref, s_ref, c_ref):
    """Linear heads sharing one feature load: aux -> softmax, disc -> sigmoid."""
    x = x_ref[...]
    logits = jnp.dot(x, wa_ref[...], preferred_element_type=jnp.float32) + ba_ref[...]
    m = jnp.max(logits, axis=1, keepdims=True)
    e = jnp.exp(logits - m)
    c_ref[...] = e / jnp.sum(e, axis=1, keepdims=True)
    d = jnp.dot(x, wd_ref[...], preferred_element_type=jnp.float32) + bd_ref[...]
    s_ref[...] = 1.0 / (1.0 + jnp.exp(-d))


# ---------------------------------------------------------------------------
# Conv wrapper (tiling + pallas_call)
# ---------------------------------------------------------------------------
def _pick_m_tile(M):
    """Largest lane tile <= MAX_TM that needs no column padding for this M."""
    if M <= MAX_TM:
        return M, M  # single full block (full-dim blocks are always legal)
    for t in range(MAX_TM, 127, -128):
        if M % t == 0:
            return t, M
    # Fallback: pad M (never hit at the test shapes). Zero columns contribute 0 to sums.
    return MAX_TM, pl.cdiv(M, MAX_TM) * MAX_TM


def conv_matmul(wmat, patches, *, slope=None, with_stats=False):
    """wmat (Cout, K) @ patches (K, M) -> (Cout, M) f32 [+ (Cout,1) sum, sumsq]."""
    Cout, K = wmat.shape
    _, M = patches.shape
    tm, Mp = _pick_m_tile(M)
    if Mp != M:
        patches = jnp.pad(patches, ((0, 0), (0, Mp - M)))
    grid = (Mp // tm,)
    w_spec = pl.BlockSpec((Cout, K), lambda i: (0, 0))
    p_spec = pl.BlockSpec((K, tm), lambda i: (0, i))
    o_spec = pl.BlockSpec((Cout, tm), lambda i: (0, i))

    if with_stats:
        out, s, sq = pl.pallas_call(
            _conv_kernel_stats,
            out_shape=(
                jax.ShapeDtypeStruct((Cout, Mp), jnp.float32),
                jax.ShapeDtypeStruct((Cout, 1), jnp.float32),
                jax.ShapeDtypeStruct((Cout, 1), jnp.float32),
            ),
            grid_spec=pltpu.PrefetchScalarGridSpec(
                num_scalar_prefetch=0,
                grid=grid,
                in_specs=[w_spec, p_spec],
                out_specs=[
                    o_spec,
                    pl.BlockSpec((Cout, 1), lambda i: (0, 0)),  # resident accumulator
                    pl.BlockSpec((Cout, 1), lambda i: (0, 0)),  # resident accumulator
                ],
            ),
            compiler_params=pltpu.CompilerParams(dimension_semantics=("arbitrary",)),
        )(wmat, patches)
    else:
        out = pl.pallas_call(
            functools.partial(_conv_kernel_plain, slope=slope),
            out_shape=jax.ShapeDtypeStruct((Cout, Mp), jnp.float32),
            grid_spec=pltpu.PrefetchScalarGridSpec(
                num_scalar_prefetch=0,
                grid=grid,
                in_specs=[w_spec, p_spec],
                out_specs=o_spec,
            ),
            compiler_params=pltpu.CompilerParams(dimension_semantics=("parallel",)),
        )(wmat, patches)
        s = sq = None

    if Mp != M:
        out = out[:, :M]
    return out, s, sq


# ---------------------------------------------------------------------------
# Glue: channel-first im2col + layer plumbing (plain JAX, XLA-fused)
# ---------------------------------------------------------------------------
def im2col_cf(x_cf, k, stride, pad):
    """x_cf (C, N, H, W) -> patches (C*k*k, N*Ho*Wo); K ordered (C, kh, kw) to match
    the OIHW weight flatten. XLA fuses the preceding elementwise (BN affine / LeakyReLU
    / dtype cast) into this pass, so only the compute-dtype patch matrix is materialized."""
    C, N, H, W = x_cf.shape
    xp = jnp.pad(x_cf, ((0, 0), (0, 0), (pad, pad), (pad, pad)))
    Ho = (H + 2 * pad - k) // stride + 1
    Wo = (W + 2 * pad - k) // stride + 1
    cols = []
    for i in range(k):
        for j in range(k):
            cols.append(xp[:, :, i:i + stride * Ho:stride, j:j + stride * Wo:stride])
    p = jnp.stack(cols, axis=1)  # (C, k*k, N, Ho, Wo)
    return p.reshape(C * k * k, N * Ho * Wo), Ho, Wo


def conv_layer(h_cf, w, stride, pad, bn_params=None, lrelu=False):
    """h_cf (Cin, N, H, W) -> (Cout, N, Ho, Wo) float32."""
    Cout, Cin, k, _ = w.shape
    _, N, _, _ = h_cf.shape
    patches, Ho, Wo = im2col_cf(h_cf.astype(_DOT_DTYPE), k, stride, pad)
    M = N * Ho * Wo
    wmat = w.reshape(Cout, Cin * k * k).astype(_DOT_DTYPE)

    if bn_params is None:
        y, _, _ = conv_matmul(wmat, patches, slope=0.2 if lrelu else None, with_stats=False)
    else:
        gamma, beta, eps = bn_params
        y, s, sq = conv_matmul(wmat, patches, with_stats=True)
        mean = s[:, 0] / M
        # Biased variance (PyTorch training-mode normalization); clamp guards the rare
        # E[x^2]-E[x]^2 cancellation going slightly negative in f32.
        var = jnp.maximum(sq[:, 0] / M - mean * mean, 0.0)
        scale = gamma / jnp.sqrt(var + eps)
        shift = beta - mean * scale
        # BN affine + LeakyReLU in plain JAX: fused by XLA into the next layer's im2col
        # read instead of a standalone HBM round trip.
        y = y * scale[:, None] + shift[:, None]
        if lrelu:
            y = jnp.where(y >= 0, y, 0.2 * y)
    return y.reshape(Cout, N, Ho, Wo)


def heads(feat, wd, bd, wa, ba):
    B = feat.shape[0]
    L = wa.shape[1]
    return pl.pallas_call(
        _heads_kernel,
        out_shape=(
            jax.ShapeDtypeStruct((B, 1), jnp.float32),
            jax.ShapeDtypeStruct((B, L), jnp.float32),
        ),
    )(feat, wd, bd, wa, ba)


def discriminator_forward(x, params):
    eps = 1e-5
    h = jnp.transpose(x, (1, 0, 2, 3))  # NCHW -> channel-first (C, N, H, W), once
    h = conv_layer(h, params["w1"], 2, 1, None, lrelu=True)
    h = conv_layer(h, params["w2"], 2, 1, (params["g2"], params["b2"], eps), lrelu=True)
    h = conv_layer(h, params["w3"], 2, 1, (params["g3"], params["b3"], eps), lrelu=True)
    h = conv_layer(h, params["w4"], 2, 1, (params["g4"], params["b4"], eps), lrelu=True)
    h = conv_layer(h, params["w5"], 1, 0, None, lrelu=False)   # (hidden, N, 1, 1)
    feat = h.reshape(h.shape[0], -1).T                         # (N, hidden) == x.view(N, -1)
    s, c = heads(feat, params["wd"], params["bd"], params["wa"], params["ba"])
    return s, c


# ---------------------------------------------------------------------------
# Deterministic parameter init (shapes from the PyTorch __init__)
# ---------------------------------------------------------------------------
def init_params(key, input_size, hidden, label_dim):
    ks = jax.random.split(key, 8)

    def w(k, shape):
        return 0.05 * jax.random.normal(k, shape, jnp.float32)

    return dict(
        w1=w(ks[0], (hidden, input_size, 4, 4)),
        w2=w(ks[1], (hidden * 2, hidden, 4, 4)),
        w3=w(ks[2], (hidden * 4, hidden * 2, 4, 4)),
        w4=w(ks[3], (hidden * 8, hidden * 4, 4, 4)),
        w5=w(ks[4], (hidden, hidden * 8, 4, 4)),
        g2=jnp.ones((hidden * 2,), jnp.float32), b2=jnp.zeros((hidden * 2,), jnp.float32),
        g3=jnp.ones((hidden * 4,), jnp.float32), b3=jnp.zeros((hidden * 4,), jnp.float32),
        g4=jnp.ones((hidden * 8,), jnp.float32), b4=jnp.zeros((hidden * 8,), jnp.float32),
        wd=w(ks[5], (hidden, 1)),          bd=jnp.zeros((1, 1), jnp.float32),
        wa=w(ks[6], (hidden, label_dim)),  ba=jnp.zeros((1, label_dim), jnp.float32),
    )


# ---------------------------------------------------------------------------
# Pure-JAX reference for validation
# ---------------------------------------------------------------------------
def ref_forward(x, params):
    def conv(x, w, stride, pad):
        return jax.lax.conv_general_dilated(
            x, w, window_strides=(stride, stride), padding=((pad, pad), (pad, pad)),
            dimension_numbers=("NCHW", "OIHW", "NCHW"),
            precision=jax.lax.Precision.HIGHEST)

    def bn(v, g, b, eps=1e-5):
        mean = jnp.mean(v, axis=(0, 2, 3), keepdims=True)
        var = jnp.mean((v - mean) ** 2, axis=(0, 2, 3), keepdims=True)
        return (v - mean) / jnp.sqrt(var + eps) * g[None, :, None, None] + b[None, :, None, None]

    lrelu = lambda v: jnp.where(v >= 0, v, 0.2 * v)
    h = lrelu(conv(x, params["w1"], 2, 1))
    h = lrelu(bn(conv(h, params["w2"], 2, 1), params["g2"], params["b2"]))
    h = lrelu(bn(conv(h, params["w3"], 2, 1), params["g3"], params["b3"]))
    h = lrelu(bn(conv(h, params["w4"], 2, 1), params["g4"], params["b4"]))
    h = conv(h, params["w5"], 1, 0)
    feat = h.reshape(h.shape[0], -1)
    c = jax.nn.softmax(feat @ params["wa"] + params["ba"], axis=1)
    s = jax.nn.sigmoid(feat @ params["wd"] + params["bd"])
    return s, c


if __name__ == "__main__":
    # Architecture requires 64x64 spatial (conv5 is a 4x4/valid conv on the 4x4 feature map).
    B, C_in, S = 2, 3, 64
    hidden, label_dim = 8, 10

    key = jax.random.PRNGKey(0)
    kx, kp = jax.random.split(key)
    x = jax.random.normal(kx, (B, C_in, S, S), jnp.float32)
    params = init_params(kp, C_in, hidden, label_dim)

    fwd = jax.jit(functools.partial(discriminator_forward, params=params))
    s, c = fwd(x)
    jax.block_until_ready((s, c))

    s_ref, c_ref = ref_forward(x, params)
    assert s.shape == (B, 1) and c.shape == (B, label_dim)
    assert bool(jnp.all(jnp.isfinite(s))) and bool(jnp.all(jnp.isfinite(c)))
    assert jnp.allclose(s, s_ref, rtol=5e-2, atol=5e-2)
    assert jnp.allclose(c, c_ref, rtol=5e-2, atol=5e-2)
    print("KERNEL_OK")
</pallas_src>

<mosaic_0001>
module attributes {stable_mosaic.version = 11 : i64} {
  func.func @_conv_kernel_plain(%arg0: i32, %arg1: memref<8x48xf32, #tpu.memory_space<vmem>>, %arg2: memref<48x512xf32, #tpu.memory_space<vmem>>, %arg3: memref<8x512xf32, #tpu.memory_space<vmem>>) attributes {dimension_semantics = [#tpu.dimension_semantics<parallel>], iteration_bounds = array<i64: 4>, scalar_prefetch = 0 : i64, scratch_operands = 0 : i64, tpu.core_type = #tpu.core_type<tc>, window_params = [{pipeline_mode = #tpu.pipeline_mode<synchronous>, transform_indices = @transform_0, window_bounds = array<i64: 8, 48>}, {transform_indices = @transform_1, window_bounds = array<i64: 48, 512>}, {transform_indices = @transform_2, window_bounds = array<i64: 8, 512>}]} {
    %c0 = arith.constant 0 : index
    %c0_0 = arith.constant 0 : index
    %0 = vector.load %arg1[%c0, %c0_0] : memref<8x48xf32, #tpu.memory_space<vmem>>, vector<8x48xf32>
    %c0_1 = arith.constant 0 : index
    %c0_2 = arith.constant 0 : index
    %1 = vector.load %arg2[%c0_1, %c0_2] : memref<48x512xf32, #tpu.memory_space<vmem>>, vector<48x512xf32>
    %cst = arith.constant dense<0.000000e+00> : vector<8x512xf32>
    %2 = tpu.matmul %0, %1, %cst {dimension_numbers = #tpu.dot_dimension_numbers<[1], [0], [0], [1], [0, 0, 1, 1], [], []>} : vector<8x48xf32>, vector<48x512xf32>, vector<8x512xf32> -> vector<8x512xf32>
    %cst_3 = arith.constant 0.000000e+00 : f32
    %3 = vector.broadcast %cst_3 : f32 to vector<8x512xf32>
    %4 = arith.cmpf oge, %2, %3 : vector<8x512xf32>
    %cst_4 = arith.constant 2.000000e-01 : f32
    %5 = vector.broadcast %cst_4 : f32 to vector<8x512xf32>
    %6 = arith.mulf %5, %2 : vector<8x512xf32>
    %7 = arith.select %4, %2, %6 : vector<8x512xi1>, vector<8x512xf32>
    %c0_5 = arith.constant 0 : index
    %c0_6 = arith.constant 0 : index
    %8 = vector.load %arg3[%c0_5, %c0_6] : memref<8x512xf32, #tpu.memory_space<vmem>>, vector<8x512xf32>
    tpu.vector_store %arg3[%c0_5, %c0_6], %7 {strides = array<i32>} : memref<8x512xf32, #tpu.memory_space<vmem>>, vector<8x512xf32>,
    return
  }
  func.func @transform_0(%arg0: i32) -> (i32, i32) {
    %c0_i32 = arith.constant 0 : i32
    %c0_i32_0 = arith.constant 0 : i32
    %c0_i32_1 = arith.constant 0 : i32
    return %c0_i32, %c0_i32_0 : i32, i32
  }
  func.func @transform_1(%arg0: i32) -> (i32, i32) {
    %c0_i32 = arith.constant 0 : i32
    %c0_i32_0 = arith.constant 0 : i32
    return %c0_i32, %arg0 : i32, i32
  }
  func.func @transform_2(%arg0: i32) -> (i32, i32) {
    %c0_i32 = arith.constant 0 : i32
    %c0_i32_0 = arith.constant 0 : i32
    return %c0_i32, %arg0 : i32, i32
  }
}

module attributes {stable_mosaic.version = 11 : i64} {
  func.func @_conv_kernel_stats(%arg0: i32, %arg1: memref<16x128xf32, #tpu.memory_space<vmem>>, %arg2: memref<128x512xf32, #tpu.memory_space<vmem>>, %arg3: memref<16x512xf32, #tpu.memory_space<vmem>>, %arg4: memref<16x1xf32, #tpu.memory_space<vmem>>, %arg5: memref<16x1xf32, #tpu.memory_space<vmem>>) attributes {dimension_semantics = [#tpu.dimension_semantics<arbitrary>], iteration_bounds = array<i64: 1>, scalar_prefetch = 0 : i64, scratch_operands = 0 : i64, tpu.core_type = #tpu.core_type<tc>, window_params = [{pipeline_mode = #tpu.pipeline_mode<synchronous>, transform_indices = @transform_0, window_bounds = array<i64: 16, 128>}, {transform_indices = @transform_1, window_bounds = array<i64: 128, 512>}, {transform_indices = @transform_2, window_bounds = array<i64: 16, 512>}, {pipeline_mode = #tpu.pipeline_mode<synchronous>, transform_indices = @transform_3, window_bounds = array<i64: 16, 1>}, {pipeline_mode = #tpu.pipeline_mode<synchronous>, transform_indices = @transform_4, window_bounds = array<i64: 16, 1>}]} {
    %c0 = arith.constant 0 : index
    %c0_0 = arith.constant 0 : index
    %0 = vector.load %arg1[%c0, %c0_0] : memref<16x128xf32, #tpu.memory_space<vmem>>, vector<16x128xf32>
    %c0_1 = arith.constant 0 : index
    %c0_2 = arith.constant 0 : index
    %1 = vector.load %arg2[%c0_1, %c0_2] : memref<128x512xf32, #tpu.memory_space<vmem>>, vector<128x512xf32>
    %cst = arith.constant dense<0.000000e+00> : vector<16x512xf32>
    %2 = tpu.matmul %0, %1, %cst {dimension_numbers = #tpu.dot_dimension_numbers<[1], [0], [0], [1], [0, 0, 1, 1], [], []>} : vector<16x128xf32>, vector<128x512xf32>, vector<16x512xf32> -> vector<16x512xf32>
    %c0_3 = arith.constant 0 : index
    %c0_4 = arith.constant 0 : index
    %3 = vector.load %arg3[%c0_3, %c0_4] : memref<16x512xf32, #tpu.memory_space<vmem>>, vector<16x512xf32>
    tpu.vector_store %arg3[%c0_3, %c0_4], %2 {strides = array<i32>} : memref<16x512xf32, #tpu.memory_space<vmem>>, vector<16x512xf32>,
    %c0_i32 = arith.constant 0 : i32
    %4 = arith.cmpi eq, %arg0, %c0_i32 : i32
    %5 = arith.extui %4 : i1 to i32
    %c0_i32_5 = arith.constant 0 : i32
    %6 = arith.cmpi ne, %5, %c0_i32_5 : i32
    scf.if %6 {
      %cst_16 = arith.constant 0.000000e+00 : f32
      %18 = vector.broadcast %cst_16 : f32 to vector<16x1xf32>
      %c0_17 = arith.constant 0 : index
      %c0_18 = arith.constant 0 : index
      %19 = vector.load %arg4[%c0_17, %c0_18] : memref<16x1xf32, #tpu.memory_space<vmem>>, vector<16x1xf32>
      tpu.vector_store %arg4[%c0_17, %c0_18], %18 {strides = array<i32>} : memref<16x1xf32, #tpu.memory_space<vmem>>, vector<16x1xf32>,
      %cst_19 = arith.constant 0.000000e+00 : f32
      %20 = vector.broadcast %cst_19 : f32 to vector<16x1xf32>
      %c0_20 = arith.constant 0 : index
      %c0_21 = arith.constant 0 : index
      %21 = vector.load %arg5[%c0_20, %c0_21] : memref<16x1xf32, #tpu.memory_space<vmem>>, vector<16x1xf32>
      tpu.vector_store %arg5[%c0_20, %c0_21], %20 {strides = array<i32>} : memref<16x1xf32, #tpu.memory_space<vmem>>, vector<16x1xf32>,
    } else {
    }
    %c0_6 = arith.constant 0 : index
    %c0_7 = arith.constant 0 : index
    %7 = vector.load %arg4[%c0_6, %c0_7] : memref<16x1xf32, #tpu.memory_space<vmem>>, vector<16x1xf32>
    %cst_8 = arith.constant dense<0.000000e+00> : vector<16xf32>
    %8 = vector.multi_reduction <add>, %2, %cst_8 [1] : vector<16x512xf32> to vector<16xf32>
    %9 = vector.shape_cast %8 : vector<16xf32> to vector<16x1xf32>
    %10 = arith.addf %7, %9 : vector<16x1xf32>
    %c0_9 = arith.constant 0 : index
    %c0_10 = arith.constant 0 : index
    %11 = vector.load %arg4[%c0_9, %c0_10] : memref<16x1xf32, #tpu.memory_space<vmem>>, vector<16x1xf32>
    tpu.vector_store %arg4[%c0_9, %c0_10], %10 {strides = array<i32>} : memref<16x1xf32, #tpu.memory_space<vmem>>, vector<16x1xf32>,
    %c0_11 = arith.constant 0 : index
    %c0_12 = arith.constant 0 : index
    %12 = vector.load %arg5[%c0_11, %c0_12] : memref<16x1xf32, #tpu.memory_space<vmem>>, vector<16x1xf32>
    %13 = arith.mulf %2, %2 : vector<16x512xf32>
    %cst_13 = arith.constant dense<0.000000e+00> : vector<16xf32>
    %14 = vector.multi_reduction <add>, %13, %cst_13 [1] : vector<16x512xf32> to vector<16xf32>
    %15 = vector.shape_cast %14 : vector<16xf32> to vector<16x1xf32>
    %16 = arith.addf %12, %15 : vector<16x1xf32>
    %c0_14 = arith.constant 0 : index
    %c0_15 = arith.constant 0 : index
    %17 = vector.load %arg5[%c0_14, %c0_15] : memref<16x1xf32, #tpu.memory_space<vmem>>, vector<16x1xf32>
    tpu.vector_store %arg5[%c0_14, %c0_15], %16 {strides = array<i32>} : memref<16x1xf32, #tpu.memory_space<vmem>>, vector<16x1xf32>,
    return
  }
  func.func @transform_0(%arg0: i32) -> (i32, i32) {
    %c0_i32 = arith.constant 0 : i32
    %c0_i32_0 = arith.constant 0 : i32
    %c0_i32_1 = arith.constant 0 : i32
    return %c0_i32, %c0_i32_0 : i32, i32
  }
  func.func @transform_1(%arg0: i32) -> (i32, i32) {
    %c0_i32 = arith.constant 0 : i32
    %c0_i32_0 = arith.constant 0 : i32
    return %c0_i32, %arg0 : i32, i32
  }
  func.func @transform_2(%arg0: i32) -> (i32, i32) {
    %c0_i32 = arith.constant 0 : i32
    %c0_i32_0 = arith.constant 0 : i32
    return %c0_i32, %arg0 : i32, i32
  }
  func.func @transform_3(%arg0: i32) -> (i32, i32) {
    %c0_i32 = arith.constant 0 : i32
    %c0_i32_0 = arith.constant 0 : i32
    %c0_i32_1 = arith.constant 0 : i32
    return %c0_i32, %c0_i32_0 : i32, i32
  }
  func.func @transform_4(%arg0: i32) -> (i32, i32) {
    %c0_i32 = arith.constant 0 : i32
    %c0_i32_0 = arith.constant 0 : i32
    %c0_i32_1 = arith.constant 0 : i32
    return %c0_i32, %c0_i32_0 : i32, i32
  }
}

module attributes {stable_mosaic.version = 11 : i64} {
  func.func @_conv_kernel_stats(%arg0: i32, %arg1: memref<32x256xf32, #tpu.memory_space<vmem>>, %arg2: memref<256x128xf32, #tpu.memory_space<vmem>>, %arg3: memref<32x128xf32, #tpu.memory_space<vmem>>, %arg4: memref<32x1xf32, #tpu.memory_space<vmem>>, %arg5: memref<32x1xf32, #tpu.memory_space<vmem>>) attributes {dimension_semantics = [#tpu.dimension_semantics<arbitrary>], iteration_bounds = array<i64: 1>, scalar_prefetch = 0 : i64, scratch_operands = 0 : i64, tpu.core_type = #tpu.core_type<tc>, window_params = [{pipeline_mode = #tpu.pipeline_mode<synchronous>, transform_indices = @transform_0, window_bounds = array<i64: 32, 256>}, {transform_indices = @transform_1, window_bounds = array<i64: 256, 128>}, {transform_indices = @transform_2, window_bounds = array<i64: 32, 128>}, {pipeline_mode = #tpu.pipeline_mode<synchronous>, transform_indices = @transform_3, window_bounds = array<i64: 32, 1>}, {pipeline_mode = #tpu.pipeline_mode<synchronous>, transform_indices = @transform_4, window_bounds = array<i64: 32, 1>}]} {
    %c0 = arith.constant 0 : index
    %c0_0 = arith.constant 0 : index
    %0 = vector.load %arg1[%c0, %c0_0] : memref<32x256xf32, #tpu.memory_space<vmem>>, vector<32x256xf32>
    %c0_1 = arith.constant 0 : index
    %c0_2 = arith.constant 0 : index
    %1 = vector.load %arg2[%c0_1, %c0_2] : memref<256x128xf32, #tpu.memory_space<vmem>>, vector<256x128xf32>
    %cst = arith.constant dense<0.000000e+00> : vector<32x128xf32>
    %2 = tpu.matmul %0, %1, %cst {dimension_numbers = #tpu.dot_dimension_numbers<[1], [0], [0], [1], [0, 0, 1, 1], [], []>} : vector<32x256xf32>, vector<256x128xf32>, vector<32x128xf32> -> vector<32x128xf32>
    %c0_3 = arith.constant 0 : index
    %c0_4 = arith.constant 0 : index
    %3 = vector.load %arg3[%c0_3, %c0_4] : memref<32x128xf32, #tpu.memory_space<vmem>>, vector<32x128xf32>
    tpu.vector_store %arg3[%c0_3, %c0_4], %2 {strides = array<i32>} : memref<32x128xf32, #tpu.memory_space<vmem>>, vector<32x128xf32>,
    %c0_i32 = arith.constant 0 : i32
    %4 = arith.cmpi eq, %arg0, %c0_i32 : i32
    %5 = arith.extui %4 : i1 to i32
    %c0_i32_5 = arith.constant 0 : i32
    %6 = arith.cmpi ne, %5, %c0_i32_5 : i32
    scf.if %6 {
      %cst_16 = arith.constant 0.000000e+00 : f32
      %18 = vector.broadcast %cst_16 : f32 to vector<32x1xf32>
      %c0_17 = arith.constant 0 : index
      %c0_18 = arith.constant 0 : index
      %19 = vector.load %arg4[%c0_17, %c0_18] : memref<32x1xf32, #tpu.memory_space<vmem>>, vector<32x1xf32>
      tpu.vector_store %arg4[%c0_17, %c0_18], %18 {strides = array<i32>} : memref<32x1xf32, #tpu.memory_space<vmem>>, vector<32x1xf32>,
      %cst_19 = arith.constant 0.000000e+00 : f32
      %20 = vector.broadcast %cst_19 : f32 to vector<32x1xf32>
      %c0_20 = arith.constant 0 : index
      %c0_21 = arith.constant 0 : index
      %21 = vector.load %arg5[%c0_20, %c0_21] : memref<32x1xf32, #tpu.memory_space<vmem>>, vector<32x1xf32>
      tpu.vector_store %arg5[%c0_20, %c0_21], %20 {strides = array<i32>} : memref<32x1xf32, #tpu.memory_space<vmem>>, vector<32x1xf32>,
    } else {
    }
    %c0_6 = arith.constant 0 : index
    %c0_7 = arith.constant 0 : index
    %7 = vector.load %arg4[%c0_6, %c0_7] : memref<32x1xf32, #tpu.memory_space<vmem>>, vector<32x1xf32>
    %cst_8 = arith.constant dense<0.000000e+00> : vector<32xf32>
    %8 = vector.multi_reduction <add>, %2, %cst_8 [1] : vector<32x128xf32> to vector<32xf32>
    %9 = vector.shape_cast %8 : vector<32xf32> to vector<32x1xf32>
    %10 = arith.addf %7, %9 : vector<32x1xf32>
    %c0_9 = arith.constant 0 : index
    %c0_10 = arith.constant 0 : index
    %11 = vector.load %arg4[%c0_9, %c0_10] : memref<32x1xf32, #tpu.memory_space<vmem>>, vector<32x1xf32>
    tpu.vector_store %arg4[%c0_9, %c0_10], %10 {strides = array<i32>} : memref<32x1xf32, #tpu.memory_space<vmem>>, vector<32x1xf32>,
    %c0_11 = arith.constant 0 : index
    %c0_12 = arith.constant 0 : index
    %12 = vector.load %arg5[%c0_11, %c0_12] : memref<32x1xf32, #tpu.memory_space<vmem>>, vector<32x1xf32>
    %13 = arith.mulf %2, %2 : vector<32x128xf32>
    %cst_13 = arith.constant dense<0.000000e+00> : vector<32xf32>
    %14 = vector.multi_reduction <add>, %13, %cst_13 [1] : vector<32x128xf32> to vector<32xf32>
    %15 = vector.shape_cast %14 : vector<32xf32> to vector<32x1xf32>
    %16 = arith.addf %12, %15 : vector<32x1xf32>
    %c0_14 = arith.constant 0 : index
    %c0_15 = arith.constant 0 : index
    %17 = vector.load %arg5[%c0_14, %c0_15] : memref<32x1xf32, #tpu.memory_space<vmem>>, vector<32x1xf32>
    tpu.vector_store %arg5[%c0_14, %c0_15], %16 {strides = array<i32>} : memref<32x1xf32, #tpu.memory_space<vmem>>, vector<32x1xf32>,
    return
  }
  func.func @transform_0(%arg0: i32) -> (i32, i32) {
    %c0_i32 = arith.constant 0 : i32
    %c0_i32_0 = arith.constant 0 : i32
    %c0_i32_1 = arith.constant 0 : i32
    return %c0_i32, %c0_i32_0 : i32, i32
  }
  func.func @transform_1(%arg0: i32) -> (i32, i32) {
    %c0_i32 = arith.constant 0 : i32
    %c0_i32_0 = arith.constant 0 : i32
    return %c0_i32, %arg0 : i32, i32
  }
  func.func @transform_2(%arg0: i32) -> (i32, i32) {
    %c0_i32 = arith.constant 0 : i32
    %c0_i32_0 = arith.constant 0 : i32
    return %c0_i32, %arg0 : i32, i32
  }
  func.func @transform_3(%arg0: i32) -> (i32, i32) {
    %c0_i32 = arith.constant 0 : i32
    %c0_i32_0 = arith.constant 0 : i32
    %c0_i32_1 = arith.constant 0 : i32
    return %c0_i32, %c0_i32_0 : i32, i32
  }
  func.func @transform_4(%arg0: i32) -> (i32, i32) {
    %c0_i32 = arith.constant 0 : i32
    %c0_i32_0 = arith.constant 0 : i32
    %c0_i32_1 = arith.constant 0 : i32
    return %c0_i32, %c0_i32_0 : i32, i32
  }
}

module attributes {stable_mosaic.version = 11 : i64} {
  func.func @_conv_kernel_stats(%arg0: i32, %arg1: memref<64x512xf32, #tpu.memory_space<vmem>>, %arg2: memref<512x32xf32, #tpu.memory_space<vmem>>, %arg3: memref<64x32xf32, #tpu.memory_space<vmem>>, %arg4: memref<64x1xf32, #tpu.memory_space<vmem>>, %arg5: memref<64x1xf32, #tpu.memory_space<vmem>>) attributes {dimension_semantics = [#tpu.dimension_semantics<arbitrary>], iteration_bounds = array<i64: 1>, scalar_prefetch = 0 : i64, scratch_operands = 0 : i64, tpu.core_type = #tpu.core_type<tc>, window_params = [{pipeline_mode = #tpu.pipeline_mode<synchronous>, transform_indices = @transform_0, window_bounds = array<i64: 64, 512>}, {transform_indices = @transform_1, window_bounds = array<i64: 512, 32>}, {transform_indices = @transform_2, window_bounds = array<i64: 64, 32>}, {pipeline_mode = #tpu.pipeline_mode<synchronous>, transform_indices = @transform_3, window_bounds = array<i64: 64, 1>}, {pipeline_mode = #tpu.pipeline_mode<synchronous>, transform_indices = @transform_4, window_bounds = array<i64: 64, 1>}]} {
    %c0 = arith.constant 0 : index
    %c0_0 = arith.constant 0 : index
    %0 = vector.load %arg1[%c0, %c0_0] : memref<64x512xf32, #tpu.memory_space<vmem>>, vector<64x512xf32>
    %c0_1 = arith.constant 0 : index
    %c0_2 = arith.constant 0 : index
    %1 = vector.load %arg2[%c0_1, %c0_2] : memref<512x32xf32, #tpu.memory_space<vmem>>, vector<512x32xf32>
    %cst = arith.constant dense<0.000000e+00> : vector<64x32xf32>
    %2 = tpu.matmul %0, %1, %cst {dimension_numbers = #tpu.dot_dimension_numbers<[1], [0], [0], [1], [0, 0, 1, 1], [], []>} : vector<64x512xf32>, vector<512x32xf32>, vector<64x32xf32> -> vector<64x32xf32>
    %c0_3 = arith.constant 0 : index
    %c0_4 = arith.constant 0 : index
    %3 = vector.load %arg3[%c0_3, %c0_4] : memref<64x32xf32, #tpu.memory_space<vmem>>, vector<64x32xf32>
    tpu.vector_store %arg3[%c0_3, %c0_4], %2 {strides = array<i32>} : memref<64x32xf32, #tpu.memory_space<vmem>>, vector<64x32xf32>,
    %c0_i32 = arith.constant 0 : i32
    %4 = arith.cmpi eq, %arg0, %c0_i32 : i32
    %5 = arith.extui %4 : i1 to i32
    %c0_i32_5 = arith.constant 0 : i32
    %6 = arith.cmpi ne, %5, %c0_i32_5 : i32
    scf.if %6 {
      %cst_16 = arith.constant 0.000000e+00 : f32
      %18 = vector.broadcast %cst_16 : f32 to vector<64x1xf32>
      %c0_17 = arith.constant 0 : index
      %c0_18 = arith.constant 0 : index
      %19 = vector.load %arg4[%c0_17, %c0_18] : memref<64x1xf32, #tpu.memory_space<vmem>>, vector<64x1xf32>
      tpu.vector_store %arg4[%c0_17, %c0_18], %18 {strides = array<i32>} : memref<64x1xf32, #tpu.memory_space<vmem>>, vector<64x1xf32>,
      %cst_19 = arith.constant 0.000000e+00 : f32
      %20 = vector.broadcast %cst_19 : f32 to vector<64x1xf32>
      %c0_20 = arith.constant 0 : index
      %c0_21 = arith.constant 0 : index
      %21 = vector.load %arg5[%c0_20, %c0_21] : memref<64x1xf32, #tpu.memory_space<vmem>>, vector<64x1xf32>
      tpu.vector_store %arg5[%c0_20, %c0_21], %20 {strides = array<i32>} : memref<64x1xf32, #tpu.memory_space<vmem>>, vector<64x1xf32>,
    } else {
    }
    %c0_6 = arith.constant 0 : index
    %c0_7 = arith.constant 0 : index
    %7 = vector.load %arg4[%c0_6, %c0_7] : memref<64x1xf32, #tpu.memory_space<vmem>>, vector<64x1xf32>
    %cst_8 = arith.constant dense<0.000000e+00> : vector<64xf32>
    %8 = vector.multi_reduction <add>, %2, %cst_8 [1] : vector<64x32xf32> to vector<64xf32>
    %9 = vector.shape_cast %8 : vector<64xf32> to vector<64x1xf32>
    %10 = arith.addf %7, %9 : vector<64x1xf32>
    %c0_9 = arith.constant 0 : index
    %c0_10 = arith.constant 0 : index
    %11 = vector.load %arg4[%c0_9, %c0_10] : memref<64x1xf32, #tpu.memory_space<vmem>>, vector<64x1xf32>
    tpu.vector_store %arg4[%c0_9, %c0_10], %10 {strides = array<i32>} : memref<64x1xf32, #tpu.memory_space<vmem>>, vector<64x1xf32>,
    %c0_11 = arith.constant 0 : index
    %c0_12 = arith.constant 0 : index
    %12 = vector.load %arg5[%c0_11, %c0_12] : memref<64x1xf32, #tpu.memory_space<vmem>>, vector<64x1xf32>
    %13 = arith.mulf %2, %2 : vector<64x32xf32>
    %cst_13 = arith.constant dense<0.000000e+00> : vector<64xf32>
    %14 = vector.multi_reduction <add>, %13, %cst_13 [1] : vector<64x32xf32> to vector<64xf32>
    %15 = vector.shape_cast %14 : vector<64xf32> to vector<64x1xf32>
    %16 = arith.addf %12, %15 : vector<64x1xf32>
    %c0_14 = arith.constant 0 : index
    %c0_15 = arith.constant 0 : index
    %17 = vector.load %arg5[%c0_14, %c0_15] : memref<64x1xf32, #tpu.memory_space<vmem>>, vector<64x1xf32>
    tpu.vector_store %arg5[%c0_14, %c0_15], %16 {strides = array<i32>} : memref<64x1xf32, #tpu.memory_space<vmem>>, vector<64x1xf32>,
    return
  }
  func.func @transform_0(%arg0: i32) -> (i32, i32) {
    %c0_i32 = arith.constant 0 : i32
    %c0_i32_0 = arith.constant 0 : i32
    %c0_i32_1 = arith.constant 0 : i32
    return %c0_i32, %c0_i32_0 : i32, i32
  }
  func.func @transform_1(%arg0: i32) -> (i32, i32) {
    %c0_i32 = arith.constant 0 : i32
    %c0_i32_0 = arith.constant 0 : i32
    return %c0_i32, %arg0 : i32, i32
  }
  func.func @transform_2(%arg0: i32) -> (i32, i32) {
    %c0_i32 = arith.constant 0 : i32
    %c0_i32_0 = arith.constant 0 : i32
    return %c0_i32, %arg0 : i32, i32
  }
  func.func @transform_3(%arg0: i32) -> (i32, i32) {
    %c0_i32 = arith.constant 0 : i32
    %c0_i32_0 = arith.constant 0 : i32
    %c0_i32_1 = arith.constant 0 : i32
    return %c0_i32, %c0_i32_0 : i32, i32
  }
  func.func @transform_4(%arg0: i32) -> (i32, i32) {
    %c0_i32 = arith.constant 0 : i32
    %c0_i32_0 = arith.constant 0 : i32
    %c0_i32_1 = arith.constant 0 : i32
    return %c0_i32, %c0_i32_0 : i32, i32
  }
}

module attributes {stable_mosaic.version = 11 : i64} {
  func.func @_conv_kernel_plain(%arg0: i32, %arg1: memref<8x1024xf32, #tpu.memory_space<vmem>>, %arg2: memref<1024x2xf32, #tpu.memory_space<vmem>>, %arg3: memref<8x2xf32, #tpu.memory_space<vmem>>) attributes {dimension_semantics = [#tpu.dimension_semantics<parallel>], iteration_bounds = array<i64: 1>, scalar_prefetch = 0 : i64, scratch_operands = 0 : i64, tpu.core_type = #tpu.core_type<tc>, window_params = [{pipeline_mode = #tpu.pipeline_mode<synchronous>, transform_indices = @transform_0, window_bounds = array<i64: 8, 1024>}, {transform_indices = @transform_1, window_bounds = array<i64: 1024, 2>}, {transform_indices = @transform_2, window_bounds = array<i64: 8, 2>}]} {
    %c0 = arith.constant 0 : index
    %c0_0 = arith.constant 0 : index
    %0 = vector.load %arg1[%c0, %c0_0] : memref<8x1024xf32, #tpu.memory_space<vmem>>, vector<8x1024xf32>
    %c0_1 = arith.constant 0 : index
    %c0_2 = arith.constant 0 : index
    %1 = vector.load %arg2[%c0_1, %c0_2] : memref<1024x2xf32, #tpu.memory_space<vmem>>, vector<1024x2xf32>
    %cst = arith.constant dense<0.000000e+00> : vector<8x2xf32>
    %2 = tpu.matmul %0, %1, %cst {dimension_numbers = #tpu.dot_dimension_numbers<[1], [0], [0], [1], [0, 0, 1, 1], [], []>} : vector<8x1024xf32>, vector<1024x2xf32>, vector<8x2xf32> -> vector<8x2xf32>
    %c0_3 = arith.constant 0 : index
    %c0_4 = arith.constant 0 : index
    %3 = vector.load %arg3[%c0_3, %c0_4] : memref<8x2xf32, #tpu.memory_space<vmem>>, vector<8x2xf32>
    tpu.vector_store %arg3[%c0_3, %c0_4], %2 {strides = array<i32>} : memref<8x2xf32, #tpu.memory_space<vmem>>, vector<8x2xf32>,
    return
  }
  func.func @transform_0(%arg0: i32) -> (i32, i32) {
    %c0_i32 = arith.constant 0 : i32
    %c0_i32_0 = arith.constant 0 : i32
    %c0_i32_1 = arith.constant 0 : i32
    return %c0_i32, %c0_i32_0 : i32, i32
  }
  func.func @transform_1(%arg0: i32) -> (i32, i32) {
    %c0_i32 = arith.constant 0 : i32
    %c0_i32_0 = arith.constant 0 : i32
    return %c0_i32, %arg0 : i32, i32
  }
  func.func @transform_2(%arg0: i32) -> (i32, i32) {
    %c0_i32 = arith.constant 0 : i32
    %c0_i32_0 = arith.constant 0 : i32
    return %c0_i32, %arg0 : i32, i32
  }
}

module attributes {stable_mosaic.version = 11 : i64} {
  func.func @_heads_kernel(%arg0: memref<2x8xf32, #tpu.memory_space<vmem>>, %arg1: memref<8x1xf32, #tpu.memory_space<vmem>>, %arg2: memref<1x1xf32, #tpu.memory_space<vmem>>, %arg3: memref<8x10xf32, #tpu.memory_space<vmem>>, %arg4: memref<1x10xf32, #tpu.memory_space<vmem>>, %arg5: memref<2x1xf32, #tpu.memory_space<vmem>>, %arg6: memref<2x10xf32, #tpu.memory_space<vmem>>) attributes {dimension_semantics = [], scalar_prefetch = 0 : i64, scratch_operands = 0 : i64, tpu.core_type = #tpu.core_type<tc>} {
    %c0 = arith.constant 0 : index
    %c0_0 = arith.constant 0 : index
    %0 = vector.load %arg0[%c0, %c0_0] : memref<2x8xf32, #tpu.memory_space<vmem>>, vector<2x8xf32>
    %c0_1 = arith.constant 0 : index
    %c0_2 = arith.constant 0 : index
    %1 = vector.load %arg3[%c0_1, %c0_2] : memref<8x10xf32, #tpu.memory_space<vmem>>, vector<8x10xf32>
    %cst = arith.constant dense<0.000000e+00> : vector<2x10xf32>
    %2 = tpu.matmul %0, %1, %cst {dimension_numbers = #tpu.dot_dimension_numbers<[1], [0], [0], [1], [0, 0, 1, 1], [], []>} : vector<2x8xf32>, vector<8x10xf32>, vector<2x10xf32> -> vector<2x10xf32>
    %c0_3 = arith.constant 0 : index
    %c0_4 = arith.constant 0 : index
    %3 = vector.load %arg4[%c0_3, %c0_4] : memref<1x10xf32, #tpu.memory_space<vmem>>, vector<1x10xf32>
    %4 = vector.broadcast %3 : vector<1x10xf32> to vector<2x10xf32>
    %5 = arith.addf %2, %4 : vector<2x10xf32>
    %cst_5 = arith.constant dense<0xFF800000> : vector<2xf32>
    %6 = vector.multi_reduction <maximumf>, %5, %cst_5 [1] : vector<2x10xf32> to vector<2xf32>
    %7 = vector.shape_cast %6 : vector<2xf32> to vector<2x1xf32>
    %8 = vector.broadcast %7 : vector<2x1xf32> to vector<2x10xf32>
    %9 = arith.subf %5, %8 : vector<2x10xf32>
    %10 = math.exp %9 : vector<2x10xf32>
    %cst_6 = arith.constant dense<0.000000e+00> : vector<2xf32>
    %11 = vector.multi_reduction <add>, %10, %cst_6 [1] : vector<2x10xf32> to vector<2xf32>
    %12 = vector.shape_cast %11 : vector<2xf32> to vector<2x1xf32>
    %13 = vector.broadcast %12 : vector<2x1xf32> to vector<2x10xf32>
    %14 = arith.divf %10, %13 : vector<2x10xf32>
    %c0_7 = arith.constant 0 : index
    %c0_8 = arith.constant 0 : index
    %15 = vector.load %arg6[%c0_7, %c0_8] : memref<2x10xf32, #tpu.memory_space<vmem>>, vector<2x10xf32>
    tpu.vector_store %arg6[%c0_7, %c0_8], %14 {strides = array<i32>} : memref<2x10xf32, #tpu.memory_space<vmem>>, vector<2x10xf32>,
    %c0_9 = arith.constant 0 : index
    %c0_10 = arith.constant 0 : index
    %16 = vector.load %arg1[%c0_9, %c0_10] : memref<8x1xf32, #tpu.memory_space<vmem>>, vector<8x1xf32>
    %cst_11 = arith.constant dense<0.000000e+00> : vector<2x1xf32>
    %17 = tpu.matmul %0, %16, %cst_11 {dimension_numbers = #tpu.dot_dimension_numbers<[1], [0], [0], [1], [0, 0, 1, 1], [], []>} : vector<2x8xf32>, vector<8x1xf32>, vector<2x1xf32> -> vector<2x1xf32>
    %c0_12 = arith.constant 0 : index
    %c0_13 = arith.constant 0 : index
    %18 = vector.load %arg2[%c0_12, %c0_13] : memref<1x1xf32, #tpu.memory_space<vmem>>, vector<1x1xf32>
    %19 = vector.broadcast %18 : vector<1x1xf32> to vector<2x1xf32>
    %20 = arith.addf %17, %19 : vector<2x1xf32>
    %cst_14 = arith.constant 0.000000e+00 : f32
    %21 = vector.broadcast %cst_14 : f32 to vector<2x1xf32>
    %22 = arith.subf %21, %20 : vector<2x1xf32>
    %23 = math.exp %22 : vector<2x1xf32>
    %cst_15 = arith.constant 1.000000e+00 : f32
    %24 = vector.broadcast %cst_15 : f32 to vector<2x1xf32>
    %25 = arith.addf %24, %23 : vector<2x1xf32>
    %cst_16 = arith.constant 1.000000e+00 : f32
    %26 = vector.broadcast %cst_16 : f32 to vector<2x1xf32>
    %27 = arith.divf %26, %25 : vector<2x1xf32>
    %c0_17 = arith.constant 0 : index
    %c0_18 = arith.constant 0 : index
    %28 = vector.load %arg5[%c0_17, %c0_18] : memref<2x1xf32, #tpu.memory_space<vmem>>, vector<2x1xf32>
    tpu.vector_store %arg5[%c0_17, %c0_18], %27 {strides = array<i32>} : memref<2x1xf32, #tpu.memory_space<vmem>>, vector<2x1xf32>,
    return
  }
}

</mosaic_0001>

<bundles_post_ra>
// kernel: discriminator_forward.6
= control target key start
LH: loop header
LB: loop body
LE: loop exit
PB: predicated region body
PF: predicated region fallthrough
CT: control target
= control target key end

     0   :  { %s566_s9 = smov 0   ;;  %s568_s10 = smov 0   ;;  %s699_s0 = inlined_call_operand.vmem [shape: f32[8,48], index: 0, kind: input, shape index: {}]   ;;  %s700_s1 = inlined_call_operand.vmem [shape: f32[48,2048], index: 1, kind: input, shape index: {}]   ;;  %s701_s2 = inlined_call_operand.vmem [shape: f32[8,2048], index: 2, kind: output, shape index: {}]  }
   0x1   :  { %s570_s11 = smov 0  }
   0x2 LB: > { %s461_s12 = sadd.s32 4294967295, %s548_s11   ;;  %s583_s13 = sadd.s32 1, %s548_s11   ;;  %s548_s11 = sphi %s570_s11, %s704_s11   ;;  %s544_s10 = sphi %s568_s10, %s703_s10   ;;  %s540_s9 = sphi %s566_s9, %s702_s9  }
   0x3   : > { %s37_s14 = ssub.s32 %s548_s11, %s583_s13  ;;  %s40_s15 = sadd.s32 1, %s544_s10 }
   0x4   : > { %p38_p0 = scmp.eq.s32.totalorder %s37_s14, 0  ;;  %p47_p1 = scmp.ne.s32.totalorder %s544_s10, %s540_s9 }
   0x5   : > { %p48_p2 = scmp.eq.s32.totalorder %s548_s11, 0  ;;  %p464_p4 = scmp.ge.s32.totalorder %s548_s11, 4 }
   0x6   : > { %s592_s16 = scalar_select %p38_p0, %s544_s10, %s40_s15  }
   0x7   : > { %p49_p3 = por %p48_p2, %p47_p1  ;;  %102 = sbr.rel (%p464_p4) target bundleno = 31 (0x1f), region = 20 }
   0xe   : > { %105 = sbr.rel (!%p49_p3) target bundleno = 31 (0x1f), region = 24  ;;  %s107_s17 = sand.u32 (%p49_p3), 1, %s544_s10  }
   0xf   : > { %s474_s18 = sshll.u32 (%p49_p3), %s548_s11, 5  ;;  %s499_s19 = smul.u32 (%p49_p3), 192, %s107_s17 }
  0x10   : > { %s600_s22 = scalar_lea.vmem (%p49_p3), %s700_s1, %s474_s18 }
  0x11   : > { %v125_v0 = vld [vmem:[%s600_s22] sm:$0xff] (%p49_p3)  ;;  %v127_v1 = vld [vmem:[%s600_s22 + $0x8] sm:$0xff] (%p49_p3)  ;;  %v129_v2 = vld [vmem:[%s600_s22 + $0x10] sm:$0xff] (%p49_p3)  ;;  %s608_s23 = scalar_lea.vmem (%p49_p3), [#allocation2], %s499_s19 }
  0x12   : > { %v131_v3 = vld [vmem:[%s600_s22 + $0x18] sm:$0xff] (%p49_p3)  ;;  %v133_v4 = vld [vmem:[%s600_s22 + $0x80] sm:$0xff] (%p49_p3)  ;;  %v135_v5 = vld [vmem:[%s600_s22 + $0x88] sm:$0xff] (%p49_p3)  ;;  %126 = vst [vmem:[%s608_s23] sm:$0xff] (%p49_p3), %v125_v0 }
  0x13   : > { %128 = vst [vmem:[%s608_s23 + $0x8] sm:$0xff] (%p49_p3), %v127_v1  ;;  %130 = vst [vmem:[%s608_s23 + $0x10] sm:$0xff] (%p49_p3), %v129_v2  ;;  %v137_v6 = vld [vmem:[%s600_s22 + $0x90] sm:$0xff] (%p49_p3)  ;;  %v139_v7 = vld [vmem:[%s600_s22 + $0x98] sm:$0xff] (%p49_p3) }
  0x14   : > { %132 = vst [vmem:[%s608_s23 + $0x18] sm:$0xff] (%p49_p3), %v131_v3  ;;  %134 = vst [vmem:[%s608_s23 + $0x20] sm:$0xff] (%p49_p3), %v133_v4  ;;  %v141_v8 = vld [vmem:[%s600_s22 + $0x100] sm:$0xff] (%p49_p3)  ;;  %v143_v9 = vld [vmem:[%s600_s22 + $0x108] sm:$0xff] (%p49_p3) }
  0x15   : > { %136 = vst [vmem:[%s608_s23 + $0x28] sm:$0xff] %v135_v5  ;;  %138 = vst [vmem:[%s608_s23 + $0x30] sm:$0xff] %v137_v6  ;;  %v145_v10 = vld [vmem:[%s600_s22 + $0x110] sm:$0xff]  ;;  %v147_v11 = vld [vmem:[%s600_s22 + $0x118] sm:$0xff] }
  0x16   : > { %140 = vst [vmem:[%s608_s23 + $0x38] sm:$0xff] %v139_v7  ;;  %142 = vst [vmem:[%s608_s23 + $0x40] sm:$0xff] %v141_v8  ;;  %v149_v12 = vld [vmem:[%s600_s22 + $0x180] sm:$0xff]  ;;  %v151_v13 = vld [vmem:[%s600_s22 + $0x188] sm:$0xff] }
  0x17   : > { %144 = vst [vmem:[%s608_s23 + $0x48] sm:$0xff] %v143_v9  ;;  %146 = vst [vmem:[%s608_s23 + $0x50] sm:$0xff] %v145_v10  ;;  %v153_v14 = vld [vmem:[%s600_s22 + $0x190] sm:$0xff]  ;;  %v155_v15 = vld [vmem:[%s600_s22 + $0x198] sm:$0xff] }
  0x18   : > { %148 = vst [vmem:[%s608_s23 + $0x58] sm:$0xff] %v147_v11  ;;  %150 = vst [vmem:[%s608_s23 + $0x60] sm:$0xff] %v149_v12  ;;  %v157_v16 = vld [vmem:[%s600_s22 + $0x200] sm:$0xff]  ;;  %v159_v17 = vld [vmem:[%s600_s22 + $0x208] sm:$0xff] }
  0x19   : > { %152 = vst [vmem:[%s608_s23 + $0x68] sm:$0xff] %v151_v13  ;;  %154 = vst [vmem:[%s608_s23 + $0x70] sm:$0xff] %v153_v14  ;;  %v161_v18 = vld [vmem:[%s600_s22 + $0x210] sm:$0xff]  ;;  %v163_v19 = vld [vmem:[%s600_s22 + $0x218] sm:$0xff] }
  0x1a   : > { %156 = vst [vmem:[%s608_s23 + $0x78] sm:$0xff] %v155_v15  ;;  %158 = vst [vmem:[%s608_s23 + $0x80] sm:$0xff] %v157_v16  ;;  %v165_v20 = vld [vmem:[%s600_s22 + $0x280] sm:$0xff]  ;;  %v167_v21 = vld [vmem:[%s600_s22 + $0x288] sm:$0xff] }
  0x1b   : > { %160 = vst [vmem:[%s608_s23 + $0x88] sm:$0xff] %v159_v17  ;;  %162 = vst [vmem:[%s608_s23 + $0x90] sm:$0xff] %v161_v18  ;;  %v169_v22 = vld [vmem:[%s600_s22 + $0x290] sm:$0xff]  ;;  %v171_v23 = vld [vmem:[%s600_s22 + $0x298] sm:$0xff] }
  0x1c   : > { %164 = vst [vmem:[%s608_s23 + $0x98] sm:$0xff] %v163_v19  ;;  %166 = vst [vmem:[%s608_s23 + $0xa0] sm:$0xff] %v165_v20 }
  0x1d   : > { %168 = vst [vmem:[%s608_s23 + $0xa8] sm:$0xff] %v167_v21  ;;  %170 = vst [vmem:[%s608_s23 + $0xb0] sm:$0xff] %v169_v22 }
  0x1e   : > { %172 = vst [vmem:[%s608_s23 + $0xb8] sm:$0xff] %v171_v23 }
  0x1f PF: > { %p467_p5 = scmp.ge.s32.totalorder %s548_s11, 1  ;;  %p177_p6 = scmp.lt.s32.totalorder %s548_s11, 5 }
  0x21   : > { %p178_p7 = pnand %p467_p5, %p177_p6 }
  0x22   : > { %s184_s24 = sand.u32 (!%p178_p7), 1, %s540_s9   ;;  %v550_v24 = vmov (!%p178_p7), 0.0   ;;  %v212_v61 = vld [vmem:[%s699_s0] sm:$0xff] (!%p178_p7)  ;;  %vm237_vm0 = vcmask (!%p178_p7), 392192   ;;  %s468_s29 = sshll.u32 (!%p178_p7), %s461_s12, 2 }
  0x23   : > { %181 = sbr.rel (%p178_p7) target bundleno = 274 (0x112), region = 47  ;;  %305 = vmatprep.mubr.f32.mxu0 (!%p178_p7), %v550_v24  ;;  %376 = vmatprep.mubr.f32.mxu1 (!%p178_p7), %v550_v24  ;;  %p207_p8 = scmp.lt.s32.totalorder (!%p178_p7), %s468_s29, 15 }
  0x24   : > { %s500_s25 = smul.u32 (!%p178_p7), 192, %s184_s24 }
  0x26   : > { %s655_s26 = scalar_lea.vmem (!%p178_p7), [#allocation2], %s500_s25 }
  0x27   : > { %v214_v25 = vld [vmem:[%s655_s26 + $0x8] sm:$0xff] (!%p178_p7)  ;;  %v216_v27 = vld [vmem:[%s655_s26 + $0x18] sm:$0xff] (!%p178_p7)  ;;  %v213_v30 = vld [vmem:[%s655_s26] sm:$0xff] (!%p178_p7) }
  0x28   : > { %v218_v26 = vld [vmem:[%s655_s26 + $0x28] sm:$0xff] (!%p178_p7)  ;;  %v220_v29 = vld [vmem:[%s655_s26 + $0x38] sm:$0xff] (!%p178_p7)  ;;  %v217_v31 = vld [vmem:[%s655_s26 + $0x20] sm:$0xff] (!%p178_p7) }
  0x29   : > { %v475_v28 = vpack.c.bf16 (!%p178_p7), %v218_v26, %v214_v25  ;;  %v487_v32 = vpack.c.bf16 (!%p178_p7), %v220_v29, %v216_v27  ;;  %v477_v33 = vpack.c.bf16 (!%p178_p7), %v217_v31, %v213_v30  ;;  %v215_v34 = vld [vmem:[%s655_s26 + $0x10] sm:$0xff] (!%p178_p7)  ;;  %v222_v36 = vld [vmem:[%s655_s26 + $0x48] sm:$0xff] (!%p178_p7)  ;;  %v224_v39 = vld [vmem:[%s655_s26 + $0x58] sm:$0xff] (!%p178_p7) }
  0x2a   : > { %v219_v35 = vld [vmem:[%s655_s26 + $0x30] sm:$0xff]  ;;  %v226_v38 = vld [vmem:[%s655_s26 + $0x68] sm:$0xff]  ;;  %v228_v40 = vld [vmem:[%s655_s26 + $0x78] sm:$0xff]  ;;  %s706_s29 = smov (!%p207_p8, %s468_s29), 15 }
  0x2b   : > { %476 = vmatprep.subr.bf16.mxu0 %v475_v28  ;;  %v489_v37 = vpack.c.bf16 %v219_v35, %v215_v34  ;;  %488 = vmatprep.subr.bf16.mxu1 %v487_v32  ;;  %v479_v41 = vpack.c.bf16 %v226_v38, %v222_v36  ;;  %v491_v42 = vpack.c.bf16 %v228_v40, %v224_v39  ;;  %v221_v43 = vld [vmem:[%s655_s26 + $0x40] sm:$0xff]  ;;  %v223_v45 = vld [vmem:[%s655_s26 + $0x50] sm:$0xff]  ;;  %v230_v48 = vld [vmem:[%s655_s26 + $0x88] sm:$0xff]  ;;  %s469_s30 = sshll.u32 %s706_s29, 3 }
  0x2c   : > { %478 = vmatpush1.bf16.msra.mxu0 %v477_v33  ;;  %v225_v44 = vld [vmem:[%s655_s26 + $0x60] sm:$0xff]  ;;  %v227_v47 = vld [vmem:[%s655_s26 + $0x70] sm:$0xff]  ;;  %v234_v49 = vld [vmem:[%s655_s26 + $0xa8] sm:$0xff]  ;;  %s210_s5 = scalar_lea.vmem %s701_s2, %s469_s30 }
  0x2d   : > { %490 = vmatpush1.bf16.msra.mxu1 %v489_v37  ;;  %v481_v46 = vpack.c.bf16 %v225_v44, %v221_v43  ;;  %480 = vmatprep.subr.bf16.mxu0 %v479_v41  ;;  %v493_v50 = vpack.c.bf16 %v227_v47, %v223_v45  ;;  %v483_v51 = vpack.c.bf16 %v234_v49, %v230_v48  ;;  %v232_v52 = vld [vmem:[%s655_s26 + $0x98] sm:$0xff]  ;;  %v229_v54 = vld [vmem:[%s655_s26 + $0x80] sm:$0xff]  ;;  %v231_v57 = vld [vmem:[%s655_s26 + $0x90] sm:$0xff] }
  0x2e   : > { %492 = vmatprep.subr.bf16.mxu1 %v491_v42  ;;  %v236_v53 = vld [vmem:[%s655_s26 + $0xb8] sm:$0xff]  ;;  %v233_v56 = vld [vmem:[%s655_s26 + $0xa0] sm:$0xff]  ;;  %v235_v58 = vld [vmem:[%s655_s26 + $0xb0] sm:$0xff] }
  0x2f   : > { %v495_v55 = vpack.c.bf16 %v236_v53, %v232_v52  ;;  %v485_v59 = vpack.c.bf16 %v233_v56, %v229_v54  ;;  %v497_v60 = vpack.c.bf16 %v235_v58, %v231_v57 }
  0x30   : > { %482 = vmatpush1.bf16.msra.mxu0 %v481_v46 }
  0x31   : > { %494 = vmatpush1.bf16.msra.mxu1 %v493_v50  ;;  %484 = vmatprep.subr.bf16.mxu0 %v483_v51 }
  0x32   : > { %496 = vmatprep.subr.bf16.mxu1 %v495_v55 }
  0x34   : > { %486 = vmatpush1.bf16.msra.mxu0 %v485_v59 }
  0x35   : > { %498 = vmatpush1.bf16.msra.mxu1 %v497_v60 }
  0x37   : > { %470 = vmatmul.mubr.msk.f32.vlgmr.msra.gmra.mrb[0].mxu0 %vm237_vm0, %v212_v61 }
  0x38   : > { %471 = vmatmul.mubr.msk.f32.vlgmr.msra.gmra.mrb[0].mxu1 %vm237_vm0, %v212_v61 }
 0x10a   : > { %v307_v62 = vpop.f32.mrb[0].mxu0 }
 0x10b   : > { %vm383_vm1 = vcmp.ge.f32.partialorder %v307_v62, 0.0  ;;  %v387_v63 = vmul.f32 0.2, %v307_v62  ;;  %v378_v0 = vpop.f32.mrb[0].mxu1  ;;  %v309_v1 = vpop.f32.mrb[1].mxu0 }
 0x10c   : > { %vm385_vm2 = vcmp.ge.f32.partialorder %v378_v0, 0.0  ;;  %v389_v2 = vmul.f32 0.2, %v378_v0  ;;  %vm384_vm3 = vcmp.ge.f32.partialorder %v309_v1, 0.0  ;;  %v388_v3 = vmul.f32 0.2, %v309_v1 }
 0x10d   : > { %v391_v4 = vsel %vm383_vm1, %v307_v62, %v387_v63  ;;  %v380_v5 = vpop.f32.mrb[1].mxu1 }
 0x10e   : > { %395 = vst [vmem:[%s210_s5] sm:$0xff] %v391_v4  ;;  %v393_v6 = vsel %vm385_vm2, %v378_v0, %v389_v2  ;;  %v392_v7 = vsel %vm384_vm3, %v309_v1, %v388_v3  ;;  %vm386_vm4 = vcmp.ge.f32.partialorder %v380_v5, 0.0  ;;  %v390_v8 = vmul.f32 0.2, %v380_v5 }
 0x10f   : > { %397 = vst [vmem:[%s210_s5 + $0x10] sm:$0xff] %v393_v6  ;;  %396 = vst [vmem:[%s210_s5 + $0x8] sm:$0xff] %v392_v7 }
 0x110   : > { %v394_v9 = vsel %vm386_vm4, %v380_v5, %v390_v8 }
 0x111   : > { %398 = vst [vmem:[%s210_s5 + $0x18] sm:$0xff] %v394_v9 }
 0x112 PF: > { %p9_p9 = scmp.ge.s32.totalorder %s583_s13, 6   ;;  %s702_s9 = smov %s544_s10 }
 0x113   : > { %s703_s10 = smov %s592_s16  ;;  %s704_s11 = smov %s583_s13 }
 0x114   :  { %11 = sbr.rel (!%p9_p9) target bundleno = 2 (0x2), region = 86 }

// kernel: discriminator_forward.7
= control target key start
LH: loop header
LB: loop body
LE: loop exit
PB: predicated region body
PF: predicated region fallthrough
CT: control target
= control target key end

     0   :  { %v369_v3 = vmov 0.0   ;;  %vm246_vm0 = vcmask 7168   ;;  %s669_s1 = inlined_call_operand.vmem [shape: f32[128,512], index: 1, kind: input, shape index: {}]   ;;  %s670_s0 = inlined_call_operand.vmem [shape: f32[16,128], index: 0, kind: input, shape index: {}]   ;;  %s671_s3 = inlined_call_operand.vmem [shape: f32[16,1], index: 3, kind: output, shape index: {1}]   ;;  %s672_s2 = inlined_call_operand.vmem [shape: f32[16,512], index: 2, kind: output, shape index: {0}]   ;;  %s673_s4 = inlined_call_operand.vmem [shape: f32[16,1], index: 4, kind: output, shape index: {2}]  }
   0x1   :  { %v17_v0 = vld [vmem:[%s669_s1 + $0x8] sm:$0xff]  ;;  %v16_v2 = vld [vmem:[%s669_s1] sm:$0xff]  ;;  %144 = vmatprep.mubr.f32.mxu0 %v369_v3  ;;  %221 = vmatprep.mubr.f32.mxu1 %v369_v3  ;;  %v19_v6 = vld [vmem:[%s669_s1 + $0x18] sm:$0xff]  ;;  %247 = vst.msk [vmem:[%s671_s3] sm:$0xff] %vm246_vm0, %v369_v3 }
   0x2   :  { %v21_v1 = vld [vmem:[%s669_s1 + $0x28] sm:$0xff]  ;;  %v20_v5 = vld [vmem:[%s669_s1 + $0x20] sm:$0xff]  ;;  %v23_v7 = vld [vmem:[%s669_s1 + $0x38] sm:$0xff]  ;;  %248 = vst.msk [vmem:[%s671_s3 + $0x8] sm:$0xff] %vm246_vm0, %v369_v3 }
   0x3   :  { %v304_v4 = vpack.c.bf16 %v21_v1, %v17_v0  ;;  %v306_v8 = vpack.c.bf16 %v20_v5, %v16_v2  ;;  %v336_v9 = vpack.c.bf16 %v23_v7, %v19_v6  ;;  %v18_v10 = vld [vmem:[%s669_s1 + $0x10] sm:$0xff]  ;;  %v25_v12 = vld [vmem:[%s669_s1 + $0x48] sm:$0xff]  ;;  %v24_v15 = vld [vmem:[%s669_s1 + $0x40] sm:$0xff]  ;;  %249 = vst.msk [vmem:[%s673_s4] sm:$0xff] %vm246_vm0, %v369_v3 }
   0x4   :  { %v22_v11 = vld [vmem:[%s669_s1 + $0x30] sm:$0xff]  ;;  %v29_v14 = vld [vmem:[%s669_s1 + $0x68] sm:$0xff]  ;;  %v28_v16 = vld [vmem:[%s669_s1 + $0x60] sm:$0xff]  ;;  %250 = vst.msk [vmem:[%s673_s4 + $0x8] sm:$0xff] %vm246_vm0, %v369_v3 }
   0x5   :  { %305 = vmatprep.subr.bf16.mxu0 %v304_v4  ;;  %v338_v13 = vpack.c.bf16 %v22_v11, %v18_v10  ;;  %337 = vmatprep.subr.bf16.mxu1 %v336_v9  ;;  %v308_v17 = vpack.c.bf16 %v29_v14, %v25_v12  ;;  %v310_v18 = vpack.c.bf16 %v28_v16, %v24_v15  ;;  %v27_v19 = vld [vmem:[%s669_s1 + $0x58] sm:$0xff]  ;;  %v26_v21 = vld [vmem:[%s669_s1 + $0x50] sm:$0xff]  ;;  %v33_v24 = vld [vmem:[%s669_s1 + $0x88] sm:$0xff] }
   0x6   :  { %307 = vmatpush1.bf16.msra.mxu0 %v306_v8  ;;  %v31_v20 = vld [vmem:[%s669_s1 + $0x78] sm:$0xff]  ;;  %v30_v23 = vld [vmem:[%s669_s1 + $0x70] sm:$0xff]  ;;  %v37_v25 = vld [vmem:[%s669_s1 + $0xa8] sm:$0xff] }
   0x7   :  { %339 = vmatpush1.bf16.msra.mxu1 %v338_v13  ;;  %v340_v22 = vpack.c.bf16 %v31_v20, %v27_v19  ;;  %309 = vmatprep.subr.bf16.mxu0 %v308_v17  ;;  %v342_v26 = vpack.c.bf16 %v30_v23, %v26_v21  ;;  %v312_v27 = vpack.c.bf16 %v37_v25, %v33_v24  ;;  %v32_v28 = vld [vmem:[%s669_s1 + $0x80] sm:$0xff]  ;;  %v35_v30 = vld [vmem:[%s669_s1 + $0x98] sm:$0xff]  ;;  %v34_v32 = vld [vmem:[%s669_s1 + $0x90] sm:$0xff] }
   0x8   :  { %v36_v29 = vld [vmem:[%s669_s1 + $0xa0] sm:$0xff]  ;;  %v39_v31 = vld [vmem:[%s669_s1 + $0xb8] sm:$0xff]  ;;  %v38_v33 = vld [vmem:[%s669_s1 + $0xb0] sm:$0xff] }
   0x9   :  { %341 = vmatprep.subr.bf16.mxu1 %v340_v22  ;;  %v314_v34 = vpack.c.bf16 %v36_v29, %v32_v28  ;;  %v344_v35 = vpack.c.bf16 %v39_v31, %v35_v30  ;;  %v41_v36 = vld [vmem:[%s669_s1 + $0xc8] sm:$0xff]  ;;  %v40_v38 = vld [vmem:[%s669_s1 + $0xc0] sm:$0xff]  ;;  %v346_v39 = vpack.c.bf16 %v38_v33, %v34_v32  ;;  %v43_v42 = vld [vmem:[%s669_s1 + $0xd8] sm:$0xff] }
   0xa   :  { %311 = vmatpush1.bf16.msra.mxu0 %v310_v18  ;;  %v45_v37 = vld [vmem:[%s669_s1 + $0xe8] sm:$0xff]  ;;  %v44_v41 = vld [vmem:[%s669_s1 + $0xe0] sm:$0xff]  ;;  %v47_v43 = vld [vmem:[%s669_s1 + $0xf8] sm:$0xff] }
   0xb   :  { %343 = vmatpush1.bf16.msra.mxu1 %v342_v26  ;;  %313 = vmatprep.subr.bf16.mxu0 %v312_v27  ;;  %v316_v40 = vpack.c.bf16 %v45_v37, %v41_v36  ;;  %v348_v44 = vpack.c.bf16 %v47_v43, %v43_v42  ;;  %v42_v45 = vld [vmem:[%s669_s1 + $0xd0] sm:$0xff]  ;;  %v49_v47 = vld [vmem:[%s669_s1 + $0x108] sm:$0xff]  ;;  %v318_v49 = vpack.c.bf16 %v44_v41, %v40_v38  ;;  %v51_v50 = vld [vmem:[%s669_s1 + $0x118] sm:$0xff] }
   0xc   :  { %345 = vmatprep.subr.bf16.mxu1 %v344_v35  ;;  %v46_v46 = vld [vmem:[%s669_s1 + $0xf0] sm:$0xff]  ;;  %v53_v48 = vld [vmem:[%s669_s1 + $0x128] sm:$0xff]  ;;  %v55_v51 = vld [vmem:[%s669_s1 + $0x138] sm:$0xff] }
   0xd   :  { %v350_v52 = vpack.c.bf16 %v46_v46, %v42_v45  ;;  %v320_v53 = vpack.c.bf16 %v53_v48, %v49_v47  ;;  %v48_v54 = vld [vmem:[%s669_s1 + $0x100] sm:$0xff]  ;;  %v50_v56 = vld [vmem:[%s669_s1 + $0x110] sm:$0xff]  ;;  %v352_v57 = vpack.c.bf16 %v55_v51, %v51_v50  ;;  %v57_v59 = vld [vmem:[%s669_s1 + $0x148] sm:$0xff] }
   0xe   :  { %315 = vmatpush1.bf16.msra.mxu0 %v314_v34  ;;  %v52_v55 = vld [vmem:[%s669_s1 + $0x120] sm:$0xff]  ;;  %v54_v58 = vld [vmem:[%s669_s1 + $0x130] sm:$0xff]  ;;  %v61_v60 = vld [vmem:[%s669_s1 + $0x168] sm:$0xff] }
   0xf   :  { %347 = vmatpush1.bf16.msra.mxu1 %v346_v39  ;;  %317 = vmatprep.subr.bf16.mxu0 %v316_v40  ;;  %v59_v61 = vld [vmem:[%s669_s1 + $0x158] sm:$0xff]  ;;  %v322_v63 = vpack.c.bf16 %v52_v55, %v48_v54  ;;  %v354_v0 = vpack.c.bf16 %v54_v58, %v50_v56  ;;  %v324_v1 = vpack.c.bf16 %v61_v60, %v57_v59  ;;  %v56_v2 = vld [vmem:[%s669_s1 + $0x140] sm:$0xff]  ;;  %v58_v5 = vld [vmem:[%s669_s1 + $0x150] sm:$0xff] }
  0x10   :  { %349 = vmatprep.subr.bf16.mxu1 %v348_v44  ;;  %v63_v62 = vld [vmem:[%s669_s1 + $0x178] sm:$0xff]  ;;  %v60_v4 = vld [vmem:[%s669_s1 + $0x160] sm:$0xff]  ;;  %v62_v7 = vld [vmem:[%s669_s1 + $0x170] sm:$0xff] }
  0x11   :  { %v356_v6 = vpack.c.bf16 %v63_v62, %v59_v61  ;;  %v65_v8 = vld [vmem:[%s669_s1 + $0x188] sm:$0xff]  ;;  %v67_v10 = vld [vmem:[%s669_s1 + $0x198] sm:$0xff]  ;;  %v326_v12 = vpack.c.bf16 %v60_v4, %v56_v2  ;;  %v358_v13 = vpack.c.bf16 %v62_v7, %v58_v5  ;;  %v64_v15 = vld [vmem:[%s669_s1 + $0x180] sm:$0xff] }
  0x12   :  { %319 = vmatpush1.bf16.msra.mxu0 %v318_v49  ;;  %v69_v9 = vld [vmem:[%s669_s1 + $0x1a8] sm:$0xff]  ;;  %v71_v11 = vld [vmem:[%s669_s1 + $0x1b8] sm:$0xff]  ;;  %v68_v16 = vld [vmem:[%s669_s1 + $0x1a0] sm:$0xff] }
  0x13   :  { %351 = vmatpush1.bf16.msra.mxu1 %v350_v52  ;;  %321 = vmatprep.subr.bf16.mxu0 %v320_v53  ;;  %v328_v14 = vpack.c.bf16 %v69_v9, %v65_v8  ;;  %v66_v17 = vld [vmem:[%s669_s1 + $0x190] sm:$0xff]  ;;  %v360_v18 = vpack.c.bf16 %v71_v11, %v67_v10  ;;  %v73_v20 = vld [vmem:[%s669_s1 + $0x1c8] sm:$0xff]  ;;  %v75_v22 = vld [vmem:[%s669_s1 + $0x1d8] sm:$0xff]  ;;  %v330_v24 = vpack.c.bf16 %v68_v16, %v64_v15 }
  0x14   :  { %353 = vmatprep.subr.bf16.mxu1 %v352_v57  ;;  %v70_v19 = vld [vmem:[%s669_s1 + $0x1b0] sm:$0xff]  ;;  %v77_v21 = vld [vmem:[%s669_s1 + $0x1e8] sm:$0xff]  ;;  %v79_v23 = vld [vmem:[%s669_s1 + $0x1f8] sm:$0xff] }
  0x15   :  { %v362_v25 = vpack.c.bf16 %v70_v19, %v66_v17  ;;  %v332_v26 = vpack.c.bf16 %v77_v21, %v73_v20  ;;  %v72_v27 = vld [vmem:[%s669_s1 + $0x1c0] sm:$0xff]  ;;  %v364_v29 = vpack.c.bf16 %v79_v23, %v75_v22  ;;  %v74_v30 = vld [vmem:[%s669_s1 + $0x1d0] sm:$0xff]  ;;  %v15_v35 = vld [vmem:[%s670_s0 + $0x8] sm:$0xff] }
  0x16   :  { %323 = vmatpush1.bf16.msra.mxu0 %v322_v63  ;;  %v76_v28 = vld [vmem:[%s669_s1 + $0x1e0] sm:$0xff]  ;;  %v78_v31 = vld [vmem:[%s669_s1 + $0x1f0] sm:$0xff]  ;;  %v252_v5 = vld [vmem:[%s671_s3 + $0x8] sm:$0xff] }
  0x17   :  { %355 = vmatpush1.bf16.msra.mxu1 %v354_v0  ;;  %325 = vmatprep.subr.bf16.mxu0 %v324_v1  ;;  %v334_v32 = vpack.c.bf16 %v76_v28, %v72_v27  ;;  %v366_v33 = vpack.c.bf16 %v78_v31, %v74_v30  ;;  %v14_v34 = vld [vmem:[%s670_s0] sm:$0xff]  ;;  %v269_v9 = vld [vmem:[%s673_s4 + $0x8] sm:$0xff] }
  0x18   :  { %357 = vmatprep.subr.bf16.mxu1 %v356_v6  ;;  %v251_v0 = vld [vmem:[%s671_s3] sm:$0xff] }
  0x19   :  { %v268_v4 = vld [vmem:[%s673_s4] sm:$0xff] }
  0x1a   :  { %327 = vmatpush1.bf16.msra.mxu0 %v326_v12 }
  0x1b   :  { %359 = vmatpush1.bf16.msra.mxu1 %v358_v13  ;;  %329 = vmatprep.subr.bf16.mxu0 %v328_v14 }
  0x1c   :  { %361 = vmatprep.subr.bf16.mxu1 %v360_v18 }
  0x1e   :  { %331 = vmatpush1.bf16.msra.mxu0 %v330_v24 }
  0x1f   :  { %363 = vmatpush1.bf16.msra.mxu1 %v362_v25  ;;  %333 = vmatprep.subr.bf16.mxu0 %v332_v26 }
  0x20   :  { %365 = vmatprep.subr.bf16.mxu1 %v364_v29 }
  0x22   :  { %335 = vmatpush1.bf16.msra.mxu0 %v334_v32 }
  0x23   :  { %367 = vmatpush1.bf16.msra.mxu1 %v366_v33 }
  0x25   :  { %145 = vmatmul.mubr.f32.vlgmr.msra.gmra.mrb[0].mxu0 %v14_v34 }
  0x26   :  { %222 = vmatmul.mubr.f32.vlgmr.msra.gmra.mrb[0].mxu1 %v14_v34  ;;  %150 = vmatprep.mubr.f32.mxu0 %v369_v3 }
  0x27   :  { %227 = vmatprep.mubr.f32.mxu1 %v369_v3 }
  0x29   :  { %151 = vmatmul.mubr.f32.gmra.mrb[2].mxu0 %v15_v35 }
  0x2a   :  { %228 = vmatmul.mubr.f32.gmra.mrb[2].mxu1 %v15_v35 }
  0xf8   :  { %v146_v36 = vpop.f32.mrb[0].mxu0 }
  0xf9   :  { %234 = vst [vmem:[%s672_s2] sm:$0xff] %v146_v36  ;;  %v270_v37 = vmul.f32 %v146_v36, %v146_v36  ;;  %v148_v38 = vpop.f32.mrb[1].mxu0  ;;  %v223_v39 = vpop.f32.mrb[0].mxu1 }
  0xfa   :  { %235 = vst [vmem:[%s672_s2 + $0x8] sm:$0xff] %v148_v38  ;;  %v253_v40 = vadd.f32 %v148_v38, %v146_v36  ;;  %v271_v41 = vmul.f32 %v148_v38, %v148_v38  ;;  %236 = vst [vmem:[%s672_s2 + $0x10] sm:$0xff] %v223_v39  ;;  %v225_v42 = vpop.f32.mrb[1].mxu1  ;;  %v272_v43 = vmul.f32 %v223_v39, %v223_v39 }
  0xfb   :  { %237 = vst [vmem:[%s672_s2 + $0x18] sm:$0xff] %v225_v42  ;;  %v273_v55 = vmul.f32 %v225_v42, %v225_v42 }
  0xfc   :  { %v152_v44 = vpop.f32.mrb[2].mxu0  ;;  %v254_v45 = vadd.f32 %v253_v40, %v223_v39  ;;  %v278_v46 = vadd.f32 %v271_v41, %v270_v37 }
  0xfd   :  { %238 = vst [vmem:[%s672_s2 + $0x20] sm:$0xff] %v152_v44  ;;  %v274_v47 = vmul.f32 %v152_v44, %v152_v44  ;;  %v154_v48 = vpop.f32.mrb[3].mxu0  ;;  %v229_v49 = vpop.f32.mrb[2].mxu1 }
  0xfe   :  { %239 = vst [vmem:[%s672_s2 + $0x28] sm:$0xff] %v154_v48  ;;  %v258_v50 = vadd.f32 %v154_v48, %v152_v44  ;;  %v275_v51 = vmul.f32 %v154_v48, %v154_v48  ;;  %240 = vst [vmem:[%s672_s2 + $0x30] sm:$0xff] %v229_v49  ;;  %v276_v52 = vmul.f32 %v229_v49, %v229_v49  ;;  %v231_v53 = vpop.f32.mrb[3].mxu1 }
  0xff   :  { %v255_v54 = vadd.f32 %v254_v45, %v225_v42  ;;  %241 = vst [vmem:[%s672_s2 + $0x38] sm:$0xff] %v231_v53  ;;  %v279_v56 = vadd.f32 %v278_v46, %v272_v43  ;;  %v277_v60 = vmul.f32 %v231_v53, %v231_v53 }
 0x100   :  { %v283_v57 = vadd.f32 %v275_v51, %v274_v47  ;;  %v259_v58 = vadd.f32 %v258_v50, %v229_v49 }
 0x101   :  { %256 = vadd.xlane.f32.xlu0 %v255_v54  ;;  %v280_v59 = vadd.f32 %v279_v56, %v273_v55 }
 0x102   :  { %v260_v61 = vadd.f32 %v259_v58, %v231_v53  ;;  %v284_v62 = vadd.f32 %v283_v57, %v276_v52 }
 0x103   :  { %281 = vadd.xlane.f32.xlu1 %v280_v59 }
 0x104   :  { %v285_v63 = vadd.f32 %v284_v62, %v277_v60 }
 0x105   :  { %261 = vadd.xlane.f32.xlu0 %v260_v61 }
 0x107   :  { %286 = vadd.xlane.f32.xlu1 %v285_v63 }
 0x18e   :  { %v257_v1 = vpop.xlane.xlu0 %256 }
 0x18f   :  { %v263_v2 = vadd.f32 %v257_v1, %v251_v0 }
 0x190   :  { %v282_v3 = vpop.xlane.xlu1 %281 }
 0x191   :  { %266 = vst.msk [vmem:[%s671_s3] sm:$0xff] %vm246_vm0, %v263_v2  ;;  %v288_v6 = vadd.f32 %v282_v3, %v268_v4 }
 0x192   :  { %v262_v7 = vpop.xlane.xlu0 %261 }
 0x193   :  { %v264_v8 = vadd.f32 %v262_v7, %v252_v5  ;;  %290 = vst.msk [vmem:[%s673_s4] sm:$0xff] %vm246_vm0, %v288_v6 }
 0x194   :  { %v287_v10 = vpop.xlane.xlu1 %286 }
 0x195   :  { %267 = vst.msk [vmem:[%s671_s3 + $0x8] sm:$0xff] %vm246_vm0, %v264_v8  ;;  %v289_v11 = vadd.f32 %v287_v10, %v269_v9 }
 0x197   :  { %291 = vst.msk [vmem:[%s673_s4 + $0x8] sm:$0xff] %vm246_vm0, %v289_v11 }

// kernel: discriminator_forward.8
= control target key start
LH: loop header
LB: loop body
LE: loop exit
PB: predicated region body
PF: predicated region fallthrough
CT: control target
= control target key end

     0   :  { %vm147_vm0 = vcmask 7168   ;;  %v306_v56 = vmov 0.0   ;;  %s552_s1 = inlined_call_operand.vmem [shape: f32[256,128], index: 1, kind: input, shape index: {}]   ;;  %s553_s0 = inlined_call_operand.vmem [shape: f32[32,256], index: 0, kind: input, shape index: {}]   ;;  %s554_s3 = inlined_call_operand.vmem [shape: f32[32,1], index: 3, kind: output, shape index: {1}]   ;;  %s555_s2 = inlined_call_operand.vmem [shape: f32[32,128], index: 2, kind: output, shape index: {0}]   ;;  %s556_s4 = inlined_call_operand.vmem [shape: f32[32,1], index: 4, kind: output, shape index: {2}]  }
   0x1   :  { %v38_v0 = vld [vmem:[%s552_s1 + $0x80] sm:$0xff]  ;;  %v39_v1 = vld [vmem:[%s552_s1 + $0x88] sm:$0xff]  ;;  %v40_v5 = vld [vmem:[%s552_s1 + $0x90] sm:$0xff]  ;;  %150 = vst.msk [vmem:[%s554_s3 + $0x10] sm:$0xff] %vm147_vm0, %v306_v56 }
   0x2   :  { %v22_v2 = vld [vmem:[%s552_s1] sm:$0xff]  ;;  %v257_v3 = vpack.c.bf16 %v39_v1, %v38_v0  ;;  %v23_v4 = vld [vmem:[%s552_s1 + $0x8] sm:$0xff]  ;;  %v41_v6 = vld [vmem:[%s552_s1 + $0x98] sm:$0xff]  ;;  %148 = vst.msk [vmem:[%s554_s3] sm:$0xff] %vm147_vm0, %v306_v56 }
   0x3   :  { %v259_v7 = vpack.c.bf16 %v23_v4, %v22_v2  ;;  %v261_v8 = vpack.c.bf16 %v41_v6, %v40_v5  ;;  %v24_v9 = vld [vmem:[%s552_s1 + $0x10] sm:$0xff]  ;;  %v25_v10 = vld [vmem:[%s552_s1 + $0x18] sm:$0xff]  ;;  %v42_v11 = vld [vmem:[%s552_s1 + $0xa0] sm:$0xff]  ;;  %149 = vst.msk [vmem:[%s554_s3 + $0x8] sm:$0xff] %vm147_vm0, %v306_v56 }
   0x4   :  { %258 = vmatprep.subr.bf16.mxu0 %v257_v3  ;;  %289 = vmatprep.subr.bf16.mxu1 %v257_v3  ;;  %v43_v12 = vld [vmem:[%s552_s1 + $0xa8] sm:$0xff]  ;;  %v263_v13 = vpack.c.bf16 %v25_v10, %v24_v9  ;;  %v26_v15 = vld [vmem:[%s552_s1 + $0x20] sm:$0xff]  ;;  %v44_v17 = vld [vmem:[%s552_s1 + $0xb0] sm:$0xff]  ;;  %151 = vst.msk [vmem:[%s554_s3 + $0x18] sm:$0xff] %vm147_vm0, %v306_v56 }
   0x5   :  { %260 = vmatpush3.bf16.msra.mxu0 %v259_v7  ;;  %297 = vmatpush3.bf16.msra.mxu1 %v259_v7  ;;  %v265_v14 = vpack.c.bf16 %v43_v12, %v42_v11  ;;  %v27_v16 = vld [vmem:[%s552_s1 + $0x28] sm:$0xff]  ;;  %v45_v18 = vld [vmem:[%s552_s1 + $0xb8] sm:$0xff]  ;;  %v28_v21 = vld [vmem:[%s552_s1 + $0x30] sm:$0xff]  ;;  %152 = vst.msk [vmem:[%s556_s4] sm:$0xff] %vm147_vm0, %v306_v56 }
   0x6   :  { %262 = vmatprep.subr.bf16.mxu0 %v261_v8  ;;  %290 = vmatprep.subr.bf16.mxu1 %v261_v8  ;;  %v267_v19 = vpack.c.bf16 %v27_v16, %v26_v15  ;;  %v269_v20 = vpack.c.bf16 %v45_v18, %v44_v17  ;;  %v29_v22 = vld [vmem:[%s552_s1 + $0x38] sm:$0xff]  ;;  %v46_v23 = vld [vmem:[%s552_s1 + $0xc0] sm:$0xff]  ;;  %v47_v24 = vld [vmem:[%s552_s1 + $0xc8] sm:$0xff]  ;;  %153 = vst.msk [vmem:[%s556_s4 + $0x8] sm:$0xff] %vm147_vm0, %v306_v56 }
   0x7   :  { %v15_v25 = vld [vmem:[%s553_s0 + $0x8] sm:$0xff]  ;;  %v271_v27 = vpack.c.bf16 %v29_v22, %v28_v21  ;;  %v273_v28 = vpack.c.bf16 %v47_v24, %v46_v23  ;;  %v30_v29 = vld [vmem:[%s552_s1 + $0x40] sm:$0xff]  ;;  %v48_v31 = vld [vmem:[%s552_s1 + $0xd0] sm:$0xff]  ;;  %154 = vst.msk [vmem:[%s556_s4 + $0x10] sm:$0xff] %vm147_vm0, %v306_v56 }
   0x8   :  { %118 = vmatprep.mubr.f32.mxu0 %v15_v25  ;;  %v19_v26 = vld [vmem:[%s553_s0 + $0x28] sm:$0xff]  ;;  %v49_v32 = vld [vmem:[%s552_s1 + $0xd8] sm:$0xff]  ;;  %v32_v35 = vld [vmem:[%s552_s1 + $0x50] sm:$0xff]  ;;  %155 = vst.msk [vmem:[%s556_s4 + $0x18] sm:$0xff] %vm147_vm0, %v306_v56 }
   0x9   :  { %264 = vmatpush3.bf16.msra.mxu0 %v263_v13  ;;  %298 = vmatpush3.bf16.msra.mxu1 %v263_v13  ;;  %v31_v30 = vld [vmem:[%s552_s1 + $0x48] sm:$0xff]  ;;  %v277_v34 = vpack.c.bf16 %v49_v32, %v48_v31  ;;  %v33_v36 = vld [vmem:[%s552_s1 + $0x58] sm:$0xff]  ;;  %v50_v37 = vld [vmem:[%s552_s1 + $0xe0] sm:$0xff] }
   0xa   :  { %266 = vmatprep.subr.bf16.mxu0 %v265_v14  ;;  %291 = vmatprep.subr.bf16.mxu1 %v265_v14  ;;  %v275_v33 = vpack.c.bf16 %v31_v30, %v30_v29  ;;  %v51_v38 = vld [vmem:[%s552_s1 + $0xe8] sm:$0xff]  ;;  %v279_v39 = vpack.c.bf16 %v33_v36, %v32_v35  ;;  %v34_v41 = vld [vmem:[%s552_s1 + $0x60] sm:$0xff]  ;;  %v52_v43 = vld [vmem:[%s552_s1 + $0xf0] sm:$0xff] }
   0xb   :  { %128 = vmatprep.mubr.f32.mxu1 %v19_v26  ;;  %v281_v40 = vpack.c.bf16 %v51_v38, %v50_v37  ;;  %v35_v42 = vld [vmem:[%s552_s1 + $0x68] sm:$0xff]  ;;  %v53_v44 = vld [vmem:[%s552_s1 + $0xf8] sm:$0xff]  ;;  %v36_v47 = vld [vmem:[%s552_s1 + $0x70] sm:$0xff] }
   0xc   :  { %v283_v45 = vpack.c.bf16 %v35_v42, %v34_v41  ;;  %v285_v46 = vpack.c.bf16 %v53_v44, %v52_v43  ;;  %v37_v48 = vld [vmem:[%s552_s1 + $0x78] sm:$0xff]  ;;  %v14_v50 = vld [vmem:[%s553_s0] sm:$0xff]  ;;  %v20_v54 = vld [vmem:[%s553_s0 + $0x30] sm:$0xff] }
   0xd   :  { %268 = vmatpush3.bf16.msra.mxu0 %v267_v19  ;;  %299 = vmatpush3.bf16.msra.mxu1 %v267_v19  ;;  %v287_v49 = vpack.c.bf16 %v37_v48, %v36_v47  ;;  %v18_v51 = vld [vmem:[%s553_s0 + $0x20] sm:$0xff]  ;;  %v21_v52 = vld [vmem:[%s553_s0 + $0x38] sm:$0xff]  ;;  %v16_v55 = vld [vmem:[%s553_s0 + $0x10] sm:$0xff] }
   0xe   :  { %270 = vmatprep.subr.bf16.mxu0 %v269_v20  ;;  %292 = vmatprep.subr.bf16.mxu1 %v269_v20  ;;  %v17_v53 = vld [vmem:[%s553_s0 + $0x18] sm:$0xff]  ;;  %v158_v9 = vld [vmem:[%s554_s3 + $0x10] sm:$0xff]  ;;  %v156_v10 = vld [vmem:[%s554_s3] sm:$0xff] }
   0xf   :  { %v159_v15 = vld [vmem:[%s554_s3 + $0x18] sm:$0xff]  ;;  %v177_v16 = vld [vmem:[%s556_s4] sm:$0xff]  ;;  %v178_v21 = vld [vmem:[%s556_s4 + $0x8] sm:$0xff] }
  0x10   :  { %v157_v22 = vld [vmem:[%s554_s3 + $0x8] sm:$0xff] }
  0x11   :  { %272 = vmatpush3.bf16.msra.mxu0 %v271_v27  ;;  %300 = vmatpush3.bf16.msra.mxu1 %v271_v27  ;;  %v180_v27 = vld [vmem:[%s556_s4 + $0x18] sm:$0xff] }
  0x12   :  { %274 = vmatprep.subr.bf16.mxu0 %v273_v28  ;;  %293 = vmatprep.subr.bf16.mxu1 %v273_v28  ;;  %v179_v28 = vld [vmem:[%s556_s4 + $0x10] sm:$0xff] }
  0x15   :  { %276 = vmatpush3.bf16.msra.mxu0 %v275_v33  ;;  %301 = vmatpush3.bf16.msra.mxu1 %v275_v33 }
  0x16   :  { %278 = vmatprep.subr.bf16.mxu0 %v277_v34  ;;  %294 = vmatprep.subr.bf16.mxu1 %v277_v34 }
  0x19   :  { %280 = vmatpush3.bf16.msra.mxu0 %v279_v39  ;;  %302 = vmatpush3.bf16.msra.mxu1 %v279_v39 }
  0x1a   :  { %282 = vmatprep.subr.bf16.mxu0 %v281_v40  ;;  %295 = vmatprep.subr.bf16.mxu1 %v281_v40 }
  0x1d   :  { %284 = vmatpush3.bf16.msra.mxu0 %v283_v45  ;;  %303 = vmatpush3.bf16.msra.mxu1 %v283_v45 }
  0x1e   :  { %286 = vmatprep.subr.bf16.mxu0 %v285_v46  ;;  %296 = vmatprep.subr.bf16.mxu1 %v285_v46 }
  0x21   :  { %288 = vmatpush3.bf16.msra.mxu0 %v287_v49  ;;  %304 = vmatpush3.bf16.msra.mxu1 %v287_v49 }
  0x24   :  { %119 = vmatmul.mubr.f32.vlgmr.msra.gmra.mrb[0].mxu0 %v14_v50  ;;  %129 = vmatmul.mubr.f32.vlgmr.msra.gmra.mrb[0].mxu1 %v18_v51 }
  0x25   :  { %133 = vmatprep.mubr.f32.mxu1 %v21_v52  ;;  %123 = vmatprep.mubr.f32.mxu0 %v17_v53 }
  0x28   :  { %134 = vmatmul.mubr.f32.gmra.mrb[2].mxu1 %v20_v54  ;;  %124 = vmatmul.mubr.f32.gmra.mrb[2].mxu0 %v16_v55 }
  0xf7   :  { %v245_v57 = vpop.f32.mrb[0].mxu0  ;;  %v251_v58 = vpop.f32.mrb[0].mxu1 }
  0xf8   :  { %v246_v59 = vpop.f32.mrb[1].mxu0  ;;  %v252_v60 = vpop.f32.mrb[1].mxu1 }
  0xf9   :  { %v247_v61 = vadd.f32 %v246_v59, %v245_v57  ;;  %v253_v62 = vadd.f32 %v252_v60, %v251_v58 }
  0xfb   :  { %139 = vst [vmem:[%s555_s2] sm:$0xff] %v247_v61  ;;  %141 = vst [vmem:[%s555_s2 + $0x10] sm:$0xff] %v253_v62  ;;  %v254_v63 = vpop.f32.mrb[2].mxu1  ;;  %164 = vadd.xlane.f32.xlu1 %v253_v62  ;;  %160 = vadd.xlane.f32.xlu0 %v247_v61  ;;  %v248_v0 = vpop.f32.mrb[2].mxu0  ;;  %v181_v5 = vmul.f32 %v247_v61, %v247_v61  ;;  %v183_v8 = vmul.f32 %v253_v62, %v253_v62 }
  0xfc   :  { %v255_v1 = vpop.f32.mrb[3].mxu1  ;;  %v249_v2 = vpop.f32.mrb[3].mxu0 }
  0xfd   :  { %v256_v3 = vadd.f32 %v255_v1, %v254_v63  ;;  %v250_v4 = vadd.f32 %v249_v2, %v248_v0 }
  0xff   :  { %142 = vst [vmem:[%s555_s2 + $0x18] sm:$0xff] %v256_v3  ;;  %140 = vst [vmem:[%s555_s2 + $0x8] sm:$0xff] %v250_v4  ;;  %166 = vadd.xlane.f32.xlu1 %v256_v3  ;;  %185 = vadd.xlane.f32.xlu0 %v181_v5  ;;  %v182_v6 = vmul.f32 %v250_v4, %v250_v4  ;;  %v184_v7 = vmul.f32 %v256_v3, %v256_v3 }
 0x103   :  { %187 = vadd.xlane.f32.xlu1 %v182_v6  ;;  %162 = vadd.xlane.f32.xlu0 %v250_v4 }
 0x107   :  { %191 = vadd.xlane.f32.xlu1 %v184_v7  ;;  %189 = vadd.xlane.f32.xlu0 %v183_v8 }
 0x188   :  { %v165_v11 = vpop.xlane.xlu1 %164  ;;  %v161_v12 = vpop.xlane.xlu0 %160 }
 0x189   :  { %v170_v13 = vadd.f32 %v165_v11, %v158_v9  ;;  %v168_v14 = vadd.f32 %v161_v12, %v156_v10 }
 0x18b   :  { %175 = vst.msk [vmem:[%s554_s3 + $0x10] sm:$0xff] %vm147_vm0, %v170_v13  ;;  %173 = vst.msk [vmem:[%s554_s3] sm:$0xff] %vm147_vm0, %v168_v14 }
 0x18c   :  { %v167_v17 = vpop.xlane.xlu1 %166  ;;  %v186_v18 = vpop.xlane.xlu0 %185 }
 0x18d   :  { %v171_v19 = vadd.f32 %v167_v17, %v159_v15  ;;  %v193_v20 = vadd.f32 %v186_v18, %v177_v16 }
 0x18f   :  { %176 = vst.msk [vmem:[%s554_s3 + $0x18] sm:$0xff] %vm147_vm0, %v171_v19  ;;  %197 = vst.msk [vmem:[%s556_s4] sm:$0xff] %vm147_vm0, %v193_v20 }
 0x190   :  { %v188_v23 = vpop.xlane.xlu1 %187  ;;  %v163_v24 = vpop.xlane.xlu0 %162 }
 0x191   :  { %v194_v25 = vadd.f32 %v188_v23, %v178_v21  ;;  %v169_v26 = vadd.f32 %v163_v24, %v157_v22 }
 0x193   :  { %198 = vst.msk [vmem:[%s556_s4 + $0x8] sm:$0xff] %vm147_vm0, %v194_v25  ;;  %174 = vst.msk [vmem:[%s554_s3 + $0x8] sm:$0xff] %vm147_vm0, %v169_v26 }
 0x194   :  { %v192_v29 = vpop.xlane.xlu1 %191  ;;  %v190_v30 = vpop.xlane.xlu0 %189 }
 0x195   :  { %v196_v31 = vadd.f32 %v192_v29, %v180_v27  ;;  %v195_v32 = vadd.f32 %v190_v30, %v179_v28 }
 0x197   :  { %200 = vst.msk [vmem:[%s556_s4 + $0x18] sm:$0xff] %vm147_vm0, %v196_v31  ;;  %199 = vst.msk [vmem:[%s556_s4 + $0x10] sm:$0xff] %vm147_vm0, %v195_v32 }

// kernel: discriminator_forward.9
= control target key start
LH: loop header
LB: loop body
LE: loop exit
PB: predicated region body
PF: predicated region fallthrough
CT: control target
= control target key end

     0   :  { %vm333_vm0 = vcmask 7168   ;;  %vm320_vm1 = vcmask 261120   ;;  %s1198_s1 = inlined_call_operand.vmem [shape: f32[512,32], index: 1, kind: input, shape index: {}]   ;;  %s1199_s0 = inlined_call_operand.vmem [shape: f32[64,512], index: 0, kind: input, shape index: {}]   ;;  %s1200_s3 = inlined_call_operand.vmem [shape: f32[64,1], index: 3, kind: output, shape index: {1}]   ;;  %s1201_s2 = inlined_call_operand.vmem [shape: f32[64,32], index: 2, kind: output, shape index: {0}]   ;;  %s1202_s4 = inlined_call_operand.vmem [shape: f32[64,1], index: 4, kind: output, shape index: {2}]  }
   0x1   :  { %v62_v0 = vld [vmem:[%s1198_s1 + $0x80] sm:$0xff]  ;;  %v63_v1 = vld [vmem:[%s1198_s1 + $0x88] sm:$0xff]  ;;  %v64_v11 = vld [vmem:[%s1198_s1 + $0x90] sm:$0xff] }
   0x2   :  { %v94_v2 = vld [vmem:[%s1198_s1 + $0x180] sm:$0xff]  ;;  %v579_v3 = vpack.c.bf16 %v63_v1, %v62_v0  ;;  %v95_v4 = vld [vmem:[%s1198_s1 + $0x188] sm:$0xff]  ;;  %v65_v13 = vld [vmem:[%s1198_s1 + $0x98] sm:$0xff] }
   0x3   :  { %v46_v5 = vld [vmem:[%s1198_s1] sm:$0xff]  ;;  %v47_v6 = vld [vmem:[%s1198_s1 + $0x8] sm:$0xff]  ;;  %v611_v7 = vpack.c.bf16 %v95_v4, %v94_v2  ;;  %v96_v14 = vld [vmem:[%s1198_s1 + $0x190] sm:$0xff]  ;;  %v583_v16 = vpack.c.bf16 %v65_v13, %v64_v11 }
   0x4   :  { %v581_v8 = vpack.c.bf16 %v47_v6, %v46_v5  ;;  %v78_v9 = vld [vmem:[%s1198_s1 + $0x100] sm:$0xff]  ;;  %v79_v10 = vld [vmem:[%s1198_s1 + $0x108] sm:$0xff]  ;;  %580 = vmatprep.subr.bf16.mxu0 %v579_v3  ;;  %v97_v15 = vld [vmem:[%s1198_s1 + $0x198] sm:$0xff] }
   0x5   :  { %v613_v12 = vpack.c.bf16 %v79_v10, %v78_v9  ;;  %612 = vmatprep.subr.bf16.mxu1 %v611_v7  ;;  %v615_v17 = vpack.c.bf16 %v97_v15, %v96_v14  ;;  %v48_v18 = vld [vmem:[%s1198_s1 + $0x10] sm:$0xff]  ;;  %v49_v19 = vld [vmem:[%s1198_s1 + $0x18] sm:$0xff]  ;;  %v66_v23 = vld [vmem:[%s1198_s1 + $0xa0] sm:$0xff] }
   0x6   :  { %582 = vmatpush3.bf16.msra.mxu0 %v581_v8  ;;  %v80_v20 = vld [vmem:[%s1198_s1 + $0x110] sm:$0xff]  ;;  %v585_v21 = vpack.c.bf16 %v49_v19, %v48_v18  ;;  %v81_v22 = vld [vmem:[%s1198_s1 + $0x118] sm:$0xff]  ;;  %v67_v24 = vld [vmem:[%s1198_s1 + $0xa8] sm:$0xff] }
   0x7   :  { %614 = vmatpush3.bf16.msra.mxu1 %v613_v12  ;;  %584 = vmatprep.subr.bf16.mxu0 %v583_v16  ;;  %v617_v25 = vpack.c.bf16 %v81_v22, %v80_v20  ;;  %v587_v26 = vpack.c.bf16 %v67_v24, %v66_v23  ;;  %v98_v27 = vld [vmem:[%s1198_s1 + $0x1a0] sm:$0xff]  ;;  %v99_v28 = vld [vmem:[%s1198_s1 + $0x1a8] sm:$0xff]  ;;  %v68_v35 = vld [vmem:[%s1198_s1 + $0xb0] sm:$0xff] }
   0x8   :  { %616 = vmatprep.subr.bf16.mxu1 %v615_v17  ;;  %v50_v29 = vld [vmem:[%s1198_s1 + $0x20] sm:$0xff]  ;;  %v619_v30 = vpack.c.bf16 %v99_v28, %v98_v27  ;;  %v51_v31 = vld [vmem:[%s1198_s1 + $0x28] sm:$0xff]  ;;  %v69_v36 = vld [vmem:[%s1198_s1 + $0xb8] sm:$0xff] }
   0x9   :  { %v82_v32 = vld [vmem:[%s1198_s1 + $0x120] sm:$0xff]  ;;  %v83_v33 = vld [vmem:[%s1198_s1 + $0x128] sm:$0xff]  ;;  %v589_v34 = vpack.c.bf16 %v51_v31, %v50_v29  ;;  %v100_v37 = vld [vmem:[%s1198_s1 + $0x1b0] sm:$0xff]  ;;  %v591_v39 = vpack.c.bf16 %v69_v36, %v68_v35 }
   0xa   :  { %586 = vmatpush3.bf16.msra.mxu0 %v585_v21  ;;  %v621_v38 = vpack.c.bf16 %v83_v33, %v82_v32  ;;  %v101_v40 = vld [vmem:[%s1198_s1 + $0x1b8] sm:$0xff]  ;;  %v52_v41 = vld [vmem:[%s1198_s1 + $0x30] sm:$0xff]  ;;  %v70_v46 = vld [vmem:[%s1198_s1 + $0xc0] sm:$0xff] }
   0xb   :  { %618 = vmatpush3.bf16.msra.mxu1 %v617_v25  ;;  %588 = vmatprep.subr.bf16.mxu0 %v587_v26  ;;  %v53_v42 = vld [vmem:[%s1198_s1 + $0x38] sm:$0xff]  ;;  %v623_v43 = vpack.c.bf16 %v101_v40, %v100_v37  ;;  %v84_v44 = vld [vmem:[%s1198_s1 + $0x130] sm:$0xff]  ;;  %v71_v47 = vld [vmem:[%s1198_s1 + $0xc8] sm:$0xff] }
   0xc   :  { %620 = vmatprep.subr.bf16.mxu1 %v619_v30  ;;  %v85_v45 = vld [vmem:[%s1198_s1 + $0x138] sm:$0xff]  ;;  %v102_v48 = vld [vmem:[%s1198_s1 + $0x1c0] sm:$0xff]  ;;  %v103_v49 = vld [vmem:[%s1198_s1 + $0x1c8] sm:$0xff]  ;;  %v593_v50 = vpack.c.bf16 %v53_v42, %v52_v41  ;;  %v595_v52 = vpack.c.bf16 %v71_v47, %v70_v46 }
   0xd   :  { %v625_v51 = vpack.c.bf16 %v85_v45, %v84_v44  ;;  %v54_v53 = vld [vmem:[%s1198_s1 + $0x40] sm:$0xff]  ;;  %v55_v54 = vld [vmem:[%s1198_s1 + $0x48] sm:$0xff]  ;;  %v627_v56 = vpack.c.bf16 %v103_v49, %v102_v48  ;;  %v72_v58 = vld [vmem:[%s1198_s1 + $0xd0] sm:$0xff] }
   0xe   :  { %590 = vmatpush3.bf16.msra.mxu0 %v589_v34  ;;  %v86_v55 = vld [vmem:[%s1198_s1 + $0x140] sm:$0xff]  ;;  %v87_v57 = vld [vmem:[%s1198_s1 + $0x148] sm:$0xff]  ;;  %v73_v59 = vld [vmem:[%s1198_s1 + $0xd8] sm:$0xff]  ;;  %v597_v62 = vpack.c.bf16 %v55_v54, %v54_v53 }
   0xf   :  { %622 = vmatpush3.bf16.msra.mxu1 %v621_v38  ;;  %592 = vmatprep.subr.bf16.mxu0 %v591_v39  ;;  %v104_v60 = vld [vmem:[%s1198_s1 + $0x1d0] sm:$0xff]  ;;  %v105_v61 = vld [vmem:[%s1198_s1 + $0x1d8] sm:$0xff]  ;;  %v629_v63 = vpack.c.bf16 %v87_v57, %v86_v55  ;;  %v599_v0 = vpack.c.bf16 %v73_v59, %v72_v58  ;;  %v74_v6 = vld [vmem:[%s1198_s1 + $0xe0] sm:$0xff] }
  0x10   :  { %624 = vmatprep.subr.bf16.mxu1 %v623_v43  ;;  %v56_v1 = vld [vmem:[%s1198_s1 + $0x50] sm:$0xff]  ;;  %v57_v2 = vld [vmem:[%s1198_s1 + $0x58] sm:$0xff]  ;;  %v631_v4 = vpack.c.bf16 %v105_v61, %v104_v60  ;;  %v75_v7 = vld [vmem:[%s1198_s1 + $0xe8] sm:$0xff] }
  0x11   :  { %v88_v3 = vld [vmem:[%s1198_s1 + $0x150] sm:$0xff]  ;;  %v89_v5 = vld [vmem:[%s1198_s1 + $0x158] sm:$0xff]  ;;  %v106_v8 = vld [vmem:[%s1198_s1 + $0x1e0] sm:$0xff]  ;;  %v601_v10 = vpack.c.bf16 %v57_v2, %v56_v1  ;;  %v603_v14 = vpack.c.bf16 %v75_v7, %v74_v6 }
  0x12   :  { %594 = vmatpush3.bf16.msra.mxu0 %v593_v50  ;;  %v107_v9 = vld [vmem:[%s1198_s1 + $0x1e8] sm:$0xff]  ;;  %v58_v11 = vld [vmem:[%s1198_s1 + $0x60] sm:$0xff]  ;;  %v633_v13 = vpack.c.bf16 %v89_v5, %v88_v3  ;;  %v17_v17 = vld [vmem:[%s1199_s0 + $0x18] sm:$0xff] }
  0x13   :  { %626 = vmatpush3.bf16.msra.mxu1 %v625_v51  ;;  %596 = vmatprep.subr.bf16.mxu0 %v595_v52  ;;  %v59_v12 = vld [vmem:[%s1198_s1 + $0x68] sm:$0xff]  ;;  %v90_v15 = vld [vmem:[%s1198_s1 + $0x160] sm:$0xff]  ;;  %v635_v18 = vpack.c.bf16 %v107_v9, %v106_v8  ;;  %v76_v20 = vld [vmem:[%s1198_s1 + $0xf0] sm:$0xff] }
  0x14   :  { %628 = vmatprep.subr.bf16.mxu1 %v627_v56  ;;  %v15_v16 = vld [vmem:[%s1199_s0 + $0x8] sm:$0xff]  ;;  %v77_v21 = vld [vmem:[%s1198_s1 + $0xf8] sm:$0xff]  ;;  %v108_v22 = vld [vmem:[%s1198_s1 + $0x1f0] sm:$0xff]  ;;  %279 = vmatprep.mubr.f32.mxu1 %v17_v17  ;;  %v605_v24 = vpack.c.bf16 %v59_v12, %v58_v11 }
  0x15   :  { %v91_v19 = vld [vmem:[%s1198_s1 + $0x168] sm:$0xff]  ;;  %174 = vmatprep.mubr.f32.mxu0 %v15_v16  ;;  %v109_v23 = vld [vmem:[%s1198_s1 + $0x1f8] sm:$0xff]  ;;  %v607_v26 = vpack.c.bf16 %v77_v21, %v76_v20  ;;  %v60_v27 = vld [vmem:[%s1198_s1 + $0x70] sm:$0xff] }
  0x16   :  { %598 = vmatpush3.bf16.msra.mxu0 %v597_v62  ;;  %v637_v25 = vpack.c.bf16 %v91_v19, %v90_v15  ;;  %v61_v28 = vld [vmem:[%s1198_s1 + $0x78] sm:$0xff]  ;;  %v639_v29 = vpack.c.bf16 %v109_v23, %v108_v22  ;;  %v92_v30 = vld [vmem:[%s1198_s1 + $0x170] sm:$0xff]  ;;  %v14_v34 = vld [vmem:[%s1199_s0] sm:$0xff] }
  0x17   :  { %630 = vmatpush3.bf16.msra.mxu1 %v629_v63  ;;  %600 = vmatprep.subr.bf16.mxu0 %v599_v0  ;;  %v93_v31 = vld [vmem:[%s1198_s1 + $0x178] sm:$0xff]  ;;  %v609_v32 = vpack.c.bf16 %v61_v28, %v60_v27  ;;  %v16_v35 = vld [vmem:[%s1199_s0 + $0x10] sm:$0xff]  ;;  %v19_v36 = vld [vmem:[%s1199_s0 + $0x28] sm:$0xff]  ;;  %v644_v0 = vmov 0.0  }
  0x18   :  { %632 = vmatprep.subr.bf16.mxu1 %v631_v4  ;;  %v641_v33 = vpack.c.bf16 %v93_v31, %v92_v30  ;;  %v21_v37 = vld [vmem:[%s1199_s0 + $0x38] sm:$0xff]  ;;  %v18_v38 = vld [vmem:[%s1199_s0 + $0x20] sm:$0xff]  ;;  %v20_v39 = vld [vmem:[%s1199_s0 + $0x30] sm:$0xff]  ;;  %334 = vst.msk [vmem:[%s1200_s3] sm:$0xff] %vm333_vm0, %v644_v0 }
  0x19   :  { %v23_v40 = vld [vmem:[%s1199_s0 + $0x48] sm:$0xff]  ;;  %v25_v41 = vld [vmem:[%s1199_s0 + $0x58] sm:$0xff]  ;;  %v22_v42 = vld [vmem:[%s1199_s0 + $0x40] sm:$0xff]  ;;  %335 = vst.msk [vmem:[%s1200_s3 + $0x8] sm:$0xff] %vm333_vm0, %v644_v0 }
  0x1a   :  { %602 = vmatpush3.bf16.msra.mxu0 %v601_v10  ;;  %v24_v43 = vld [vmem:[%s1199_s0 + $0x50] sm:$0xff]  ;;  %v27_v44 = vld [vmem:[%s1199_s0 + $0x68] sm:$0xff]  ;;  %v29_v45 = vld [vmem:[%s1199_s0 + $0x78] sm:$0xff]  ;;  %336 = vst.msk [vmem:[%s1200_s3 + $0x10] sm:$0xff] %vm333_vm0, %v644_v0 }
  0x1b   :  { %634 = vmatpush3.bf16.msra.mxu1 %v633_v13  ;;  %604 = vmatprep.subr.bf16.mxu0 %v603_v14  ;;  %v26_v46 = vld [vmem:[%s1199_s0 + $0x60] sm:$0xff]  ;;  %v28_v47 = vld [vmem:[%s1199_s0 + $0x70] sm:$0xff]  ;;  %v31_v48 = vld [vmem:[%s1199_s0 + $0x88] sm:$0xff]  ;;  %337 = vst.msk [vmem:[%s1200_s3 + $0x18] sm:$0xff] %vm333_vm0, %v644_v0 }
  0x1c   :  { %636 = vmatprep.subr.bf16.mxu1 %v635_v18  ;;  %v33_v49 = vld [vmem:[%s1199_s0 + $0x98] sm:$0xff]  ;;  %v30_v50 = vld [vmem:[%s1199_s0 + $0x80] sm:$0xff]  ;;  %v32_v51 = vld [vmem:[%s1199_s0 + $0x90] sm:$0xff]  ;;  %338 = vst.msk [vmem:[%s1200_s3 + $0x20] sm:$0xff] %vm333_vm0, %v644_v0 }
  0x1d   :  { %v35_v52 = vld [vmem:[%s1199_s0 + $0xa8] sm:$0xff]  ;;  %v37_v53 = vld [vmem:[%s1199_s0 + $0xb8] sm:$0xff]  ;;  %v34_v54 = vld [vmem:[%s1199_s0 + $0xa0] sm:$0xff]  ;;  %339 = vst.msk [vmem:[%s1200_s3 + $0x28] sm:$0xff] %vm333_vm0, %v644_v0 }
  0x1e   :  { %606 = vmatpush3.bf16.msra.mxu0 %v605_v24  ;;  %v36_v55 = vld [vmem:[%s1199_s0 + $0xb0] sm:$0xff]  ;;  %v39_v56 = vld [vmem:[%s1199_s0 + $0xc8] sm:$0xff]  ;;  %v41_v57 = vld [vmem:[%s1199_s0 + $0xd8] sm:$0xff]  ;;  %340 = vst.msk [vmem:[%s1200_s3 + $0x30] sm:$0xff] %vm333_vm0, %v644_v0 }
  0x1f   :  { %638 = vmatpush3.bf16.msra.mxu1 %v637_v25  ;;  %608 = vmatprep.subr.bf16.mxu0 %v607_v26  ;;  %v38_v58 = vld [vmem:[%s1199_s0 + $0xc0] sm:$0xff]  ;;  %v40_v59 = vld [vmem:[%s1199_s0 + $0xd0] sm:$0xff]  ;;  %v43_v60 = vld [vmem:[%s1199_s0 + $0xe8] sm:$0xff]  ;;  %341 = vst.msk [vmem:[%s1200_s3 + $0x38] sm:$0xff] %vm333_vm0, %v644_v0 }
  0x20   :  { %640 = vmatprep.subr.bf16.mxu1 %v639_v29  ;;  %v45_v61 = vld [vmem:[%s1199_s0 + $0xf8] sm:$0xff]  ;;  %v42_v62 = vld [vmem:[%s1199_s0 + $0xe0] sm:$0xff]  ;;  %v44_v63 = vld [vmem:[%s1199_s0 + $0xf0] sm:$0xff]  ;;  %342 = vst.msk [vmem:[%s1202_s4] sm:$0xff] %vm333_vm0, %v644_v0 }
  0x21   :  { %343 = vst.msk [vmem:[%s1202_s4 + $0x8] sm:$0xff] %vm333_vm0, %v644_v0  ;;  %344 = vst.msk [vmem:[%s1202_s4 + $0x10] sm:$0xff] %vm333_vm0, %v644_v0 }
  0x22   :  { %610 = vmatpush3.bf16.msra.mxu0 %v609_v32  ;;  %345 = vst.msk [vmem:[%s1202_s4 + $0x18] sm:$0xff] %vm333_vm0, %v644_v0  ;;  %346 = vst.msk [vmem:[%s1202_s4 + $0x20] sm:$0xff] %vm333_vm0, %v644_v0 }
  0x23   :  { %642 = vmatpush3.bf16.msra.mxu1 %v641_v33  ;;  %347 = vst.msk [vmem:[%s1202_s4 + $0x28] sm:$0xff] %vm333_vm0, %v644_v0  ;;  %348 = vst.msk [vmem:[%s1202_s4 + $0x30] sm:$0xff] %vm333_vm0, %v644_v0 }
  0x24   :  { %349 = vst.msk [vmem:[%s1202_s4 + $0x38] sm:$0xff] %vm333_vm0, %v644_v0 }
  0x25   :  { %175 = vmatmul.mubr.f32.vlgmr.msra.gmra.mrb[0].mxu0 %v14_v34 }
  0x26   :  { %280 = vmatmul.mubr.f32.vlgmr.msra.gmra.mrb[0].mxu1 %v16_v35  ;;  %179 = vmatprep.mubr.f32.mxu0 %v19_v36 }
  0x27   :  { %284 = vmatprep.mubr.f32.mxu1 %v21_v37 }
  0x29   :  { %180 = vmatmul.mubr.f32.gmra.mrb[2].mxu0 %v18_v38 }
  0x2a   :  { %285 = vmatmul.mubr.f32.gmra.mrb[2].mxu1 %v20_v39  ;;  %184 = vmatprep.mubr.f32.mxu0 %v23_v40 }
  0x2b   :  { %289 = vmatprep.mubr.f32.mxu1 %v25_v41 }
  0x2d   :  { %185 = vmatmul.mubr.f32.gmra.mrb[4].mxu0 %v22_v42 }
  0x2e   :  { %290 = vmatmul.mubr.f32.gmra.mrb[4].mxu1 %v24_v43  ;;  %189 = vmatprep.mubr.f32.mxu0 %v27_v44 }
  0x2f   :  { %294 = vmatprep.mubr.f32.mxu1 %v29_v45 }
  0x31   :  { %190 = vmatmul.mubr.f32.gmra.mrb[6].mxu0 %v26_v46 }
  0x32   :  { %295 = vmatmul.mubr.f32.gmra.mrb[6].mxu1 %v28_v47  ;;  %194 = vmatprep.mubr.f32.mxu0 %v31_v48 }
  0x33   :  { %299 = vmatprep.mubr.f32.mxu1 %v33_v49 }
  0x35   :  { %195 = vmatmul.mubr.f32.gmra.mrb[8].mxu0 %v30_v50 }
  0x36   :  { %300 = vmatmul.mubr.f32.gmra.mrb[8].mxu1 %v32_v51  ;;  %199 = vmatprep.mubr.f32.mxu0 %v35_v52 }
  0x37   :  { %304 = vmatprep.mubr.f32.mxu1 %v37_v53 }
  0x39   :  { %200 = vmatmul.mubr.f32.gmra.mrb[10].mxu0 %v34_v54 }
  0x3a   :  { %305 = vmatmul.mubr.f32.gmra.mrb[10].mxu1 %v36_v55  ;;  %204 = vmatprep.mubr.f32.mxu0 %v39_v56 }
  0x3b   :  { %309 = vmatprep.mubr.f32.mxu1 %v41_v57 }
  0x3d   :  { %205 = vmatmul.mubr.f32.gmra.mrb[12].mxu0 %v38_v58 }
  0x3e   :  { %310 = vmatmul.mubr.f32.gmra.mrb[12].mxu1 %v40_v59  ;;  %209 = vmatprep.mubr.f32.mxu0 %v43_v60 }
  0x3f   :  { %314 = vmatprep.mubr.f32.mxu1 %v45_v61 }
  0x41   :  { %210 = vmatmul.mubr.f32.gmra.mrb[14].mxu0 %v42_v62 }
  0x42   :  { %315 = vmatmul.mubr.f32.gmra.mrb[14].mxu1 %v44_v63 }
  0xf8   :  { %v499_v1 = vpop.f32.mrb[0].mxu0 }
  0xf9   :  { %v555_v2 = vpop.f32.mrb[0].mxu1  ;;  %v500_v3 = vpop.f32.mrb[1].mxu0 }
  0xfa   :  { %v501_v4 = vadd.f32 %v500_v3, %v499_v1  ;;  %v556_v5 = vpop.f32.mrb[1].mxu1 }
  0xfb   :  { %v557_v6 = vadd.f32 %v556_v5, %v555_v2 }
  0xfc   :  { %v502_v7 = vpop.f32.mrb[2].mxu0 }
  0xfd   :  { %v282_v8 = vadd.f32 %v557_v6, %v501_v4  ;;  %v558_v9 = vpop.f32.mrb[2].mxu1  ;;  %v503_v10 = vpop.f32.mrb[3].mxu0 }
  0xfe   :  { %v504_v11 = vadd.f32 %v503_v10, %v502_v7  ;;  %v559_v12 = vpop.f32.mrb[3].mxu1 }
  0xff   :  { %321 = vst.msk [vmem:[%s1201_s2] sm:$0xff] %vm320_vm1, %v282_v8  ;;  %v560_v13 = vadd.f32 %v559_v12, %v558_v9  ;;  %v358_v14 = vsel %vm320_vm1, %v282_v8, 0.0  ;;  %v407_v15 = vmul.f32 %v282_v8, %v282_v8 }
 0x100   :  { %359 = vadd.xlane.f32.xlu0 %v358_v14  ;;  %v505_v16 = vpop.f32.mrb[4].mxu0 }
 0x101   :  { %v287_v17 = vadd.f32 %v560_v13, %v504_v11  ;;  %v561_v18 = vpop.f32.mrb[4].mxu1  ;;  %v506_v19 = vpop.f32.mrb[5].mxu0  ;;  %v415_v23 = vsel %vm320_vm1, %v407_v15, 0.0 }
 0x102   :  { %v507_v20 = vadd.f32 %v506_v19, %v505_v16  ;;  %v562_v21 = vpop.f32.mrb[5].mxu1 }
 0x103   :  { %322 = vst.msk [vmem:[%s1201_s2 + $0x8] sm:$0xff] %vm320_vm1, %v287_v17  ;;  %v563_v22 = vadd.f32 %v562_v21, %v561_v18  ;;  %v408_v24 = vmul.f32 %v287_v17, %v287_v17  ;;  %v361_v33 = vsel %vm320_vm1, %v287_v17, 0.0  ;;  %v350_v17 = vld [vmem:[%s1200_s3] sm:$0xff] }
 0x104   :  { %416 = vadd.xlane.f32.xlu0 %v415_v23  ;;  %v508_v25 = vpop.f32.mrb[6].mxu0 }
 0x105   :  { %v292_v26 = vadd.f32 %v563_v22, %v507_v20  ;;  %v564_v27 = vpop.f32.mrb[6].mxu1  ;;  %v418_v28 = vsel %vm320_vm1, %v408_v24, 0.0  ;;  %v509_v29 = vpop.f32.mrb[7].mxu0  ;;  %v399_v20 = vld [vmem:[%s1202_s4] sm:$0xff]  ;;  %v400_v22 = vld [vmem:[%s1202_s4 + $0x8] sm:$0xff] }
 0x106   :  { %419 = vadd.xlane.f32.xlu1 %v418_v28  ;;  %v510_v30 = vadd.f32 %v509_v29, %v508_v25  ;;  %v565_v31 = vpop.f32.mrb[7].mxu1  ;;  %v351_v25 = vld [vmem:[%s1200_s3 + $0x8] sm:$0xff]  ;;  %v352_v28 = vld [vmem:[%s1200_s3 + $0x10] sm:$0xff] }
 0x107   :  { %323 = vst.msk [vmem:[%s1201_s2 + $0x10] sm:$0xff] %vm320_vm1, %v292_v26  ;;  %v566_v32 = vadd.f32 %v565_v31, %v564_v27  ;;  %v364_v34 = vsel %vm320_vm1, %v292_v26, 0.0  ;;  %v409_v35 = vmul.f32 %v292_v26, %v292_v26  ;;  %v401_v31 = vld [vmem:[%s1202_s4 + $0x10] sm:$0xff] }
 0x108   :  { %362 = vadd.xlane.f32.xlu0 %v361_v33  ;;  %v511_v36 = vpop.f32.mrb[8].mxu0 }
 0x109   :  { %v297_v37 = vadd.f32 %v566_v32, %v510_v30  ;;  %v567_v38 = vpop.f32.mrb[8].mxu1  ;;  %v512_v39 = vpop.f32.mrb[9].mxu0  ;;  %v421_v40 = vsel %vm320_vm1, %v409_v35, 0.0 }
 0x10a   :  { %v513_v41 = vadd.f32 %v512_v39, %v511_v36  ;;  %v568_v42 = vpop.f32.mrb[9].mxu1  ;;  %365 = vadd.xlane.f32.xlu1 %v364_v34  ;;  %v353_v34 = vld [vmem:[%s1200_s3 + $0x18] sm:$0xff] }
 0x10b   :  { %324 = vst.msk [vmem:[%s1201_s2 + $0x18] sm:$0xff] %vm320_vm1, %v297_v37  ;;  %v569_v43 = vadd.f32 %v568_v42, %v567_v38  ;;  %v367_v44 = vsel %vm320_vm1, %v297_v37, 0.0  ;;  %v410_v49 = vmul.f32 %v297_v37, %v297_v37  ;;  %v354_v37 = vld [vmem:[%s1200_s3 + $0x20] sm:$0xff] }
 0x10c   :  { %422 = vadd.xlane.f32.xlu0 %v421_v40  ;;  %v514_v45 = vpop.f32.mrb[10].mxu0  ;;  %v402_v40 = vld [vmem:[%s1202_s4 + $0x18] sm:$0xff] }
 0x10d   :  { %v302_v46 = vadd.f32 %v569_v43, %v513_v41  ;;  %v570_v47 = vpop.f32.mrb[10].mxu1  ;;  %v515_v48 = vpop.f32.mrb[11].mxu0  ;;  %v424_v59 = vsel %vm320_vm1, %v410_v49, 0.0  ;;  %v403_v43 = vld [vmem:[%s1202_s4 + $0x20] sm:$0xff]  ;;  %v356_v49 = vld [vmem:[%s1200_s3 + $0x30] sm:$0xff] }
 0x10e   :  { %368 = vadd.xlane.f32.xlu1 %v367_v44  ;;  %v516_v50 = vadd.f32 %v515_v48, %v514_v45  ;;  %v571_v51 = vpop.f32.mrb[11].mxu1 }
 0x10f   :  { %325 = vst.msk [vmem:[%s1201_s2 + $0x20] sm:$0xff] %vm320_vm1, %v302_v46  ;;  %v572_v52 = vadd.f32 %v571_v51, %v570_v47  ;;  %v370_v53 = vsel %vm320_vm1, %v302_v46, 0.0  ;;  %v411_v54 = vmul.f32 %v302_v46, %v302_v46  ;;  %v355_v46 = vld [vmem:[%s1200_s3 + $0x28] sm:$0xff] }
 0x110   :  { %371 = vadd.xlane.f32.xlu0 %v370_v53  ;;  %v517_v55 = vpop.f32.mrb[12].mxu0 }
 0x111   :  { %v307_v56 = vadd.f32 %v572_v52, %v516_v50  ;;  %v573_v57 = vpop.f32.mrb[12].mxu1  ;;  %v518_v58 = vpop.f32.mrb[13].mxu0  ;;  %v427_v60 = vsel %vm320_vm1, %v411_v54, 0.0  ;;  %v404_v52 = vld [vmem:[%s1202_s4 + $0x28] sm:$0xff] }
 0x112   :  { %v519_v61 = vadd.f32 %v518_v58, %v517_v55  ;;  %v574_v62 = vpop.f32.mrb[13].mxu1  ;;  %425 = vadd.xlane.f32.xlu1 %v424_v59  ;;  %v405_v55 = vld [vmem:[%s1202_s4 + $0x30] sm:$0xff]  ;;  %v357_v58 = vld [vmem:[%s1200_s3 + $0x38] sm:$0xff] }
 0x113   :  { %326 = vst.msk [vmem:[%s1201_s2 + $0x28] sm:$0xff] %vm320_vm1, %v307_v56  ;;  %v575_v63 = vadd.f32 %v574_v62, %v573_v57  ;;  %v373_v0 = vsel %vm320_vm1, %v307_v56, 0.0  ;;  %v412_v5 = vmul.f32 %v307_v56, %v307_v56  ;;  %v406_v62 = vld [vmem:[%s1202_s4 + $0x38] sm:$0xff] }
 0x114   :  { %428 = vadd.xlane.f32.xlu0 %v427_v60  ;;  %v520_v1 = vpop.f32.mrb[14].mxu0 }
 0x115   :  { %v312_v2 = vadd.f32 %v575_v63, %v519_v61  ;;  %v576_v3 = vpop.f32.mrb[14].mxu1  ;;  %v521_v4 = vpop.f32.mrb[15].mxu0  ;;  %v430_v12 = vsel %vm320_vm1, %v412_v5, 0.0 }
 0x116   :  { %374 = vadd.xlane.f32.xlu1 %v373_v0  ;;  %v522_v6 = vadd.f32 %v521_v4, %v520_v1  ;;  %v577_v7 = vpop.f32.mrb[15].mxu1 }
 0x117   :  { %327 = vst.msk [vmem:[%s1201_s2 + $0x30] sm:$0xff] %vm320_vm1, %v312_v2  ;;  %v578_v8 = vadd.f32 %v577_v7, %v576_v3  ;;  %v376_v9 = vsel %vm320_vm1, %v312_v2, 0.0  ;;  %v413_v10 = vmul.f32 %v312_v2, %v312_v2 }
 0x118   :  { %377 = vadd.xlane.f32.xlu0 %v376_v9 }
 0x119   :  { %v317_v11 = vadd.f32 %v578_v8, %v522_v6  ;;  %v433_v13 = vsel %vm320_vm1, %v413_v10, 0.0 }
 0x11a   :  { %431 = vadd.xlane.f32.xlu1 %v430_v12 }
 0x11b   :  { %328 = vst.msk [vmem:[%s1201_s2 + $0x38] sm:$0xff] %vm320_vm1, %v317_v11  ;;  %v379_v14 = vsel %vm320_vm1, %v317_v11, 0.0  ;;  %v414_v15 = vmul.f32 %v317_v11, %v317_v11 }
 0x11c   :  { %434 = vadd.xlane.f32.xlu0 %v433_v13 }
 0x11d   :  { %v436_v16 = vsel %vm320_vm1, %v414_v15, 0.0 }
 0x11e   :  { %380 = vadd.xlane.f32.xlu1 %v379_v14 }
 0x122   :  { %437 = vadd.xlane.f32.xlu1 %v436_v16 }
 0x18d   :  { %v360_v18 = vpop.xlane.xlu0 %359 }
 0x18e   :  { %v382_v19 = vadd.f32 %v360_v18, %v350_v17 }
 0x190   :  { %391 = vst.msk [vmem:[%s1200_s3] sm:$0xff] %vm333_vm0, %v382_v19 }
 0x191   :  { %v417_v21 = vpop.xlane.xlu0 %416 }
 0x192   :  { %v439_v23 = vadd.f32 %v417_v21, %v399_v20 }
 0x193   :  { %v420_v24 = vpop.xlane.xlu1 %419 }
 0x194   :  { %447 = vst.msk [vmem:[%s1202_s4] sm:$0xff] %vm333_vm0, %v439_v23  ;;  %v440_v26 = vadd.f32 %v420_v24, %v400_v22 }
 0x195   :  { %v363_v27 = vpop.xlane.xlu0 %362 }
 0x196   :  { %448 = vst.msk [vmem:[%s1202_s4 + $0x8] sm:$0xff] %vm333_vm0, %v440_v26  ;;  %v383_v29 = vadd.f32 %v363_v27, %v351_v25 }
 0x197   :  { %v366_v30 = vpop.xlane.xlu1 %365 }
 0x198   :  { %392 = vst.msk [vmem:[%s1200_s3 + $0x8] sm:$0xff] %vm333_vm0, %v383_v29  ;;  %v384_v32 = vadd.f32 %v366_v30, %v352_v28 }
 0x199   :  { %v423_v33 = vpop.xlane.xlu0 %422 }
 0x19a   :  { %393 = vst.msk [vmem:[%s1200_s3 + $0x10] sm:$0xff] %vm333_vm0, %v384_v32  ;;  %v441_v35 = vadd.f32 %v423_v33, %v401_v31 }
 0x19b   :  { %v369_v36 = vpop.xlane.xlu1 %368 }
 0x19c   :  { %449 = vst.msk [vmem:[%s1202_s4 + $0x10] sm:$0xff] %vm333_vm0, %v441_v35  ;;  %v385_v38 = vadd.f32 %v369_v36, %v353_v34 }
 0x19d   :  { %v372_v39 = vpop.xlane.xlu0 %371 }
 0x19e   :  { %394 = vst.msk [vmem:[%s1200_s3 + $0x18] sm:$0xff] %vm333_vm0, %v385_v38  ;;  %v386_v41 = vadd.f32 %v372_v39, %v354_v37 }
 0x19f   :  { %v426_v42 = vpop.xlane.xlu1 %425 }
 0x1a0   :  { %395 = vst.msk [vmem:[%s1200_s3 + $0x20] sm:$0xff] %vm333_vm0, %v386_v41  ;;  %v442_v44 = vadd.f32 %v426_v42, %v402_v40 }
 0x1a1   :  { %v429_v45 = vpop.xlane.xlu0 %428 }
 0x1a2   :  { %450 = vst.msk [vmem:[%s1202_s4 + $0x18] sm:$0xff] %vm333_vm0, %v442_v44  ;;  %v443_v47 = vadd.f32 %v429_v45, %v403_v43 }
 0x1a3   :  { %v375_v48 = vpop.xlane.xlu1 %374 }
 0x1a4   :  { %451 = vst.msk [vmem:[%s1202_s4 + $0x20] sm:$0xff] %vm333_vm0, %v443_v47  ;;  %v387_v50 = vadd.f32 %v375_v48, %v355_v46 }
 0x1a5   :  { %v378_v51 = vpop.xlane.xlu0 %377 }
 0x1a6   :  { %396 = vst.msk [vmem:[%s1200_s3 + $0x28] sm:$0xff] %vm333_vm0, %v387_v50  ;;  %v388_v53 = vadd.f32 %v378_v51, %v356_v49 }
 0x1a7   :  { %v432_v54 = vpop.xlane.xlu1 %431 }
 0x1a8   :  { %397 = vst.msk [vmem:[%s1200_s3 + $0x30] sm:$0xff] %vm333_vm0, %v388_v53  ;;  %v444_v56 = vadd.f32 %v432_v54, %v404_v52 }
 0x1a9   :  { %v435_v57 = vpop.xlane.xlu0 %434 }
 0x1aa   :  { %452 = vst.msk [vmem:[%s1202_s4 + $0x28] sm:$0xff] %vm333_vm0, %v444_v56  ;;  %v445_v59 = vadd.f32 %v435_v57, %v405_v55 }
 0x1ab   :  { %v381_v60 = vpop.xlane.xlu1 %380 }
 0x1ac   :  { %453 = vst.msk [vmem:[%s1202_s4 + $0x30] sm:$0xff] %vm333_vm0, %v445_v59  ;;  %v389_v61 = vadd.f32 %v381_v60, %v357_v58 }
 0x1ae   :  { %398 = vst.msk [vmem:[%s1200_s3 + $0x38] sm:$0xff] %vm333_vm0, %v389_v61 }
 0x1af   :  { %v438_v63 = vpop.xlane.xlu1 %437 }
 0x1b0   :  { %v446_v0 = vadd.f32 %v438_v63, %v406_v62 }
 0x1b2   :  { %454 = vst.msk [vmem:[%s1202_s4 + $0x38] sm:$0xff] %vm333_vm0, %v446_v0 }

// kernel: discriminator_forward.11
= control target key start
LH: loop header
LB: loop body
LE: loop exit
PB: predicated region body
PF: predicated region fallthrough
CT: control target
= control target key end

     0   :  { %s349_s0 = inlined_call_operand.vmem [shape: f32[2,8], index: 0, kind: input, shape index: {}]   ;;  %s350_s1 = inlined_call_operand.vmem [shape: f32[8,1], index: 1, kind: input, shape index: {}]   ;;  %s351_s2 = inlined_call_operand.<no memory space> [shape: f32[1,1], index: 2, kind: input, shape index: {}]   ;;  %s352_s3 = inlined_call_operand.vmem [shape: f32[8,10], index: 3, kind: input, shape index: {}]   ;;  %s353_s4 = inlined_call_operand.vmem [shape: f32[1,10], index: 4, kind: input, shape index: {}]   ;;  %s354_s5 = inlined_call_operand.vmem [shape: f32[2,1], index: 5, kind: output, shape index: {0}]   ;;  %s355_s6 = inlined_call_operand.hbm [shape: f32[2,10], index: 6, kind: output, shape index: {1}]  }
   0x1   :  { %v12_v0 = vstv %s351_s2 }
   0x2   :  { %13 = vst [vmem:[#allocation2] sm:$0x1] %v12_v0 }
   0x3   :  { %v26_v1 = vld [vmem:[%s352_s3] sm:$0xff]  ;;  %vm34_vm0 = vcmask 64512   ;;  %v278_v3 = vmov 0.0   ;;  %vm279_vm1 = vmmov 0  }
   0x4   :  { %v25_v2 = vld [vmem:[%s349_s0] sm:$0x3]  ;;  %233 = vmatprep.subr.mxu0 %v278_v3  ;;  %235 = vmatprep.mubr.msk.f32.mxu0 %vm279_vm1, %v278_v3 }
   0x5   :  { %14 = vsyncpa [#allocation4], 0  ;;  %234 = vmatpush3.msra.mxu0 %v26_v1  ;;  %238 = vmatprep.subr.mxu1 %v278_v3  ;;  %v121_v4 = vld [vmem:[%s350_s1] sm:$0xff]  ;;  %vm108_vm2 = vcmask 74752   ;;  %vm205_vm3 = vcmask 1024  }
   0x6   :  { %236 = vmatmul.mubr.msk.f32.vlgmr.msra.gmra.mrb[0].mxu0 %vm34_vm0, %v25_v2  ;;  %240 = vmatprep.mubr.msk.f32.mxu1 %vm279_vm1, %v278_v3  ;;  %v225_v5 = vld [vmem:[%s353_s4] ss:$0 sm:$0xff]  ;;  %s280_s4 = smov [#allocation3]  }
   0x7   :  { %239 = vmatpush3.msra.mxu1 %v121_v4  ;;  %s215_s29 = sshll.u32 %s280_s4, 4  ;;  %s216_s29 = int_to_ptr.vmem [resolvable:$true] %s215_s29 }
   0x8   :  { %241 = vmatmul.mubr.msk.f32.vlgmr.msra.gmra.mrb[0].mxu1 %vm34_vm0, %v25_v2  ;;  %s254_s30 = scalar_lea.vmem %s216_s29, 32  ;;  %p259_p1 = scmp.lt.s32.totalorder %s216_s29, %s216_s29 }
   0x9   :  { %v227_v10 = vld [vmem:[#allocation2] ss:$0 sm:$0xff]  ;;  %p255_p0 = scmp.ne.s32.totalorder %s216_s29, %s254_s30  ;;  %p260_p2 = scmp.lt.s32.totalorder %s254_s30, %s254_s30 }
   0xb   :  { %p261_p3 = por %p260_p2, %p259_p1 }
   0xd   :  { %p262_p4 = pnand %p261_p3, %p255_p0 }
  0xd9   :  { %v104_v6 = vpop.f32.mrb[0].mxu0 }
  0xda   :  { %v105_v7 = vadd.f32 %v225_v5, %v104_v6  ;;  %v237_v8 = vpop.f32.mrb[1].mxu0 }
  0xdb   :  { %v195_v11 = vpop.f32.mrb[0].mxu1 }
  0xdc   :  { %v109_v9 = vsel %vm108_vm2, %v105_v7, -inf  ;;  %v196_v12 = vadd.f32 %v227_v10, %v195_v11  ;;  %v242_v13 = vpop.f32.mrb[1].mxu1 }
  0xdd   :  { %110 = vmax.xlane.f32.xlu0 %v109_v9 }
  0xde   :  { %v199_v14 = vsub.f32 0.0, %v196_v12 }
  0xe0   :  { %v200_v15 = vmul.f32 1.442695, %v199_v14 }
  0xe2   :  { %246 = vpow2.f32 %v200_v15 }
  0xec   :  { %v247_v16 = vpop.eup %246 }
  0xed   :  { %v202_v17 = vadd.f32 1.0, %v247_v16 }
  0xef   :  { %248 = vrcp.f32 %v202_v17 }
  0xf9   :  { %v249_v18 = vpop.eup %248 }
  0xfa   :  { %206 = vst.msk [vmem:[%s354_s5] sm:$0x3] %vm205_vm3, %v249_v18 }
 0x16a   :  { %v111_v19 = vpop.xlane.xlu0 %110 }
 0x16b   :  { %v112_v20 = vsub.f32 %v105_v7, %v111_v19 }
 0x16d   :  { %v113_v21 = vmul.f32 1.442695, %v112_v20 }
 0x16f   :  { %250 = vpow2.f32 %v113_v21 }
 0x179   :  { %v251_v22 = vpop.eup %250 }
 0x17a   :  { %v115_v23 = vsel %vm108_vm2, %v251_v22, 0.0 }
 0x17b   :  { %116 = vadd.xlane.f32.xlu0 %v115_v23 }
 0x208   :  { %v117_v24 = vpop.xlane.xlu0 %116 }
 0x209   :  { %252 = vrcp.f32 %v117_v24 }
 0x213   :  { %v253_v25 = vpop.eup %252 }
 0x214   :  { %v119_v26 = vmul.f32 %v253_v25, %v251_v22 }
 0x216   :  { %120 = vst.msk [vmem:[#allocation3] sm:$0x3] %vm108_vm2, %v119_v26 }
 0x217   :  { %265 = shalt.err (!%p262_p4)
}
 0x218   :  { %s266_s8 = scalar_lea.hbm %s355_s6, 32 }
 0x219   :  { %p267_p5 = scmp.ne.s32.totalorder %s355_s6, %s266_s8  ;;  %p270_p6 = scmp.lt.u32.totalorder %s266_s8, %s355_s6 }
 0x21b   :  { %p272_p7 = pnand %p270_p6, %p267_p5 }
 0x21d   :  { %275 = shalt.err (!%p272_p7)
}
 0x21e   :  { %218 = dma.vmem_to_hbm [thread:$0]  %s216_s29, 32, %s355_s6, [#allocation4]  }
 0x21f   :  { %276 = dma.done.wait [#allocation4], 32  }
 0x220   :  { %277 = vsyncadd [#allocation4], 4294967264 }
 0x221   :  { %224 = vsyncpa [#allocation4], 1 }

// kernel: discriminator_forward.10
= control target key start
LH: loop header
LB: loop body
LE: loop exit
PB: predicated region body
PF: predicated region fallthrough
CT: control target
= control target key end

     0   :  { %vm427_vm0 = vcmask 15360   ;;  %s1127_s1 = inlined_call_operand.vmem [shape: f32[1024,2], index: 1, kind: input, shape index: {}]   ;;  %s1128_s0 = inlined_call_operand.vmem [shape: f32[8,1024], index: 0, kind: input, shape index: {}]   ;;  %s1129_s2 = inlined_call_operand.vmem [shape: f32[8,2], index: 2, kind: output, shape index: {}]  }
   0x1   :  { %v35_v0 = vld [vmem:[%s1127_s1 + $0x80] sm:$0xff]  ;;  %v36_v1 = vld [vmem:[%s1127_s1 + $0x88] sm:$0xff]  ;;  %v37_v11 = vld [vmem:[%s1127_s1 + $0x90] sm:$0xff] }
   0x2   :  { %v67_v2 = vld [vmem:[%s1127_s1 + $0x180] sm:$0xff]  ;;  %v573_v3 = vpack.c.bf16 %v36_v1, %v35_v0  ;;  %v68_v4 = vld [vmem:[%s1127_s1 + $0x188] sm:$0xff]  ;;  %v38_v13 = vld [vmem:[%s1127_s1 + $0x98] sm:$0xff] }
   0x3   :  { %v19_v5 = vld [vmem:[%s1127_s1] sm:$0xff]  ;;  %v20_v6 = vld [vmem:[%s1127_s1 + $0x8] sm:$0xff]  ;;  %v605_v7 = vpack.c.bf16 %v68_v4, %v67_v2  ;;  %v69_v14 = vld [vmem:[%s1127_s1 + $0x190] sm:$0xff]  ;;  %v577_v16 = vpack.c.bf16 %v38_v13, %v37_v11 }
   0x4   :  { %v575_v8 = vpack.c.bf16 %v20_v6, %v19_v5  ;;  %v51_v9 = vld [vmem:[%s1127_s1 + $0x100] sm:$0xff]  ;;  %v52_v10 = vld [vmem:[%s1127_s1 + $0x108] sm:$0xff]  ;;  %574 = vmatprep.subr.bf16.mxu0 %v573_v3  ;;  %v70_v15 = vld [vmem:[%s1127_s1 + $0x198] sm:$0xff] }
   0x5   :  { %v607_v12 = vpack.c.bf16 %v52_v10, %v51_v9  ;;  %606 = vmatprep.subr.bf16.mxu1 %v605_v7  ;;  %v609_v17 = vpack.c.bf16 %v70_v15, %v69_v14  ;;  %v21_v18 = vld [vmem:[%s1127_s1 + $0x10] sm:$0xff]  ;;  %v22_v19 = vld [vmem:[%s1127_s1 + $0x18] sm:$0xff]  ;;  %v39_v23 = vld [vmem:[%s1127_s1 + $0xa0] sm:$0xff] }
   0x6   :  { %576 = vmatpush3.bf16.msra.mxu0 %v575_v8  ;;  %v53_v20 = vld [vmem:[%s1127_s1 + $0x110] sm:$0xff]  ;;  %v579_v21 = vpack.c.bf16 %v22_v19, %v21_v18  ;;  %v54_v22 = vld [vmem:[%s1127_s1 + $0x118] sm:$0xff]  ;;  %v40_v24 = vld [vmem:[%s1127_s1 + $0xa8] sm:$0xff] }
   0x7   :  { %608 = vmatpush3.bf16.msra.mxu1 %v607_v12  ;;  %578 = vmatprep.subr.bf16.mxu0 %v577_v16  ;;  %v611_v25 = vpack.c.bf16 %v54_v22, %v53_v20  ;;  %v581_v26 = vpack.c.bf16 %v40_v24, %v39_v23  ;;  %v71_v27 = vld [vmem:[%s1127_s1 + $0x1a0] sm:$0xff]  ;;  %v72_v28 = vld [vmem:[%s1127_s1 + $0x1a8] sm:$0xff]  ;;  %v41_v35 = vld [vmem:[%s1127_s1 + $0xb0] sm:$0xff] }
   0x8   :  { %610 = vmatprep.subr.bf16.mxu1 %v609_v17  ;;  %v23_v29 = vld [vmem:[%s1127_s1 + $0x20] sm:$0xff]  ;;  %v613_v30 = vpack.c.bf16 %v72_v28, %v71_v27  ;;  %v24_v31 = vld [vmem:[%s1127_s1 + $0x28] sm:$0xff]  ;;  %v42_v36 = vld [vmem:[%s1127_s1 + $0xb8] sm:$0xff] }
   0x9   :  { %v55_v32 = vld [vmem:[%s1127_s1 + $0x120] sm:$0xff]  ;;  %v56_v33 = vld [vmem:[%s1127_s1 + $0x128] sm:$0xff]  ;;  %v583_v34 = vpack.c.bf16 %v24_v31, %v23_v29  ;;  %v73_v37 = vld [vmem:[%s1127_s1 + $0x1b0] sm:$0xff]  ;;  %v585_v39 = vpack.c.bf16 %v42_v36, %v41_v35 }
   0xa   :  { %580 = vmatpush3.bf16.msra.mxu0 %v579_v21  ;;  %v615_v38 = vpack.c.bf16 %v56_v33, %v55_v32  ;;  %v74_v40 = vld [vmem:[%s1127_s1 + $0x1b8] sm:$0xff]  ;;  %v25_v41 = vld [vmem:[%s1127_s1 + $0x30] sm:$0xff]  ;;  %v43_v46 = vld [vmem:[%s1127_s1 + $0xc0] sm:$0xff] }
   0xb   :  { %612 = vmatpush3.bf16.msra.mxu1 %v611_v25  ;;  %582 = vmatprep.subr.bf16.mxu0 %v581_v26  ;;  %v26_v42 = vld [vmem:[%s1127_s1 + $0x38] sm:$0xff]  ;;  %v617_v43 = vpack.c.bf16 %v74_v40, %v73_v37  ;;  %v57_v44 = vld [vmem:[%s1127_s1 + $0x130] sm:$0xff]  ;;  %v44_v47 = vld [vmem:[%s1127_s1 + $0xc8] sm:$0xff] }
   0xc   :  { %614 = vmatprep.subr.bf16.mxu1 %v613_v30  ;;  %v58_v45 = vld [vmem:[%s1127_s1 + $0x138] sm:$0xff]  ;;  %v75_v48 = vld [vmem:[%s1127_s1 + $0x1c0] sm:$0xff]  ;;  %v76_v49 = vld [vmem:[%s1127_s1 + $0x1c8] sm:$0xff]  ;;  %v587_v50 = vpack.c.bf16 %v26_v42, %v25_v41  ;;  %v589_v52 = vpack.c.bf16 %v44_v47, %v43_v46 }
   0xd   :  { %v619_v51 = vpack.c.bf16 %v58_v45, %v57_v44  ;;  %v27_v53 = vld [vmem:[%s1127_s1 + $0x40] sm:$0xff]  ;;  %v28_v54 = vld [vmem:[%s1127_s1 + $0x48] sm:$0xff]  ;;  %v621_v56 = vpack.c.bf16 %v76_v49, %v75_v48  ;;  %v45_v58 = vld [vmem:[%s1127_s1 + $0xd0] sm:$0xff] }
   0xe   :  { %584 = vmatpush3.bf16.msra.mxu0 %v583_v34  ;;  %v59_v55 = vld [vmem:[%s1127_s1 + $0x140] sm:$0xff]  ;;  %v60_v57 = vld [vmem:[%s1127_s1 + $0x148] sm:$0xff]  ;;  %v46_v59 = vld [vmem:[%s1127_s1 + $0xd8] sm:$0xff]  ;;  %v591_v62 = vpack.c.bf16 %v28_v54, %v27_v53 }
   0xf   :  { %616 = vmatpush3.bf16.msra.mxu1 %v615_v38  ;;  %586 = vmatprep.subr.bf16.mxu0 %v585_v39  ;;  %v77_v60 = vld [vmem:[%s1127_s1 + $0x1d0] sm:$0xff]  ;;  %v78_v61 = vld [vmem:[%s1127_s1 + $0x1d8] sm:$0xff]  ;;  %v623_v63 = vpack.c.bf16 %v60_v57, %v59_v55  ;;  %v593_v0 = vpack.c.bf16 %v46_v59, %v45_v58  ;;  %v47_v6 = vld [vmem:[%s1127_s1 + $0xe0] sm:$0xff] }
  0x10   :  { %618 = vmatprep.subr.bf16.mxu1 %v617_v43  ;;  %v29_v1 = vld [vmem:[%s1127_s1 + $0x50] sm:$0xff]  ;;  %v30_v2 = vld [vmem:[%s1127_s1 + $0x58] sm:$0xff]  ;;  %v625_v4 = vpack.c.bf16 %v78_v61, %v77_v60  ;;  %v48_v7 = vld [vmem:[%s1127_s1 + $0xe8] sm:$0xff] }
  0x11   :  { %v61_v3 = vld [vmem:[%s1127_s1 + $0x150] sm:$0xff]  ;;  %v62_v5 = vld [vmem:[%s1127_s1 + $0x158] sm:$0xff]  ;;  %v79_v8 = vld [vmem:[%s1127_s1 + $0x1e0] sm:$0xff]  ;;  %v595_v10 = vpack.c.bf16 %v30_v2, %v29_v1  ;;  %v597_v14 = vpack.c.bf16 %v48_v7, %v47_v6 }
  0x12   :  { %588 = vmatpush3.bf16.msra.mxu0 %v587_v50  ;;  %v80_v9 = vld [vmem:[%s1127_s1 + $0x1e8] sm:$0xff]  ;;  %v31_v11 = vld [vmem:[%s1127_s1 + $0x60] sm:$0xff]  ;;  %v627_v13 = vpack.c.bf16 %v62_v5, %v61_v3  ;;  %v14_v17 = vld [vmem:[%s1128_s0 + $0x18] sm:$0xff] }
  0x13   :  { %620 = vmatpush3.bf16.msra.mxu1 %v619_v51  ;;  %590 = vmatprep.subr.bf16.mxu0 %v589_v52  ;;  %v32_v12 = vld [vmem:[%s1127_s1 + $0x68] sm:$0xff]  ;;  %v63_v15 = vld [vmem:[%s1127_s1 + $0x160] sm:$0xff]  ;;  %v629_v18 = vpack.c.bf16 %v80_v9, %v79_v8  ;;  %v49_v20 = vld [vmem:[%s1127_s1 + $0xf0] sm:$0xff] }
  0x14   :  { %622 = vmatprep.subr.bf16.mxu1 %v621_v56  ;;  %v12_v16 = vld [vmem:[%s1128_s0 + $0x8] sm:$0xff]  ;;  %v50_v21 = vld [vmem:[%s1127_s1 + $0xf8] sm:$0xff]  ;;  %v81_v22 = vld [vmem:[%s1127_s1 + $0x1f0] sm:$0xff]  ;;  %281 = vmatprep.mubr.f32.mxu1 %v14_v17  ;;  %v599_v24 = vpack.c.bf16 %v32_v12, %v31_v11 }
  0x15   :  { %v64_v19 = vld [vmem:[%s1127_s1 + $0x168] sm:$0xff]  ;;  %211 = vmatprep.mubr.f32.mxu0 %v12_v16  ;;  %v82_v23 = vld [vmem:[%s1127_s1 + $0x1f8] sm:$0xff]  ;;  %v601_v26 = vpack.c.bf16 %v50_v21, %v49_v20  ;;  %v33_v27 = vld [vmem:[%s1127_s1 + $0x70] sm:$0xff] }
  0x16   :  { %592 = vmatpush3.bf16.msra.mxu0 %v591_v62  ;;  %v631_v25 = vpack.c.bf16 %v64_v19, %v63_v15  ;;  %v34_v28 = vld [vmem:[%s1127_s1 + $0x78] sm:$0xff]  ;;  %v65_v29 = vld [vmem:[%s1127_s1 + $0x170] sm:$0xff]  ;;  %v633_v30 = vpack.c.bf16 %v82_v23, %v81_v22  ;;  %v99_v32 = vld [vmem:[%s1127_s1 + $0x280] sm:$0xff] }
  0x17   :  { %624 = vmatpush3.bf16.msra.mxu1 %v623_v63  ;;  %594 = vmatprep.subr.bf16.mxu0 %v593_v0  ;;  %v66_v31 = vld [vmem:[%s1127_s1 + $0x178] sm:$0xff]  ;;  %v100_v33 = vld [vmem:[%s1127_s1 + $0x288] sm:$0xff]  ;;  %v131_v34 = vld [vmem:[%s1127_s1 + $0x380] sm:$0xff]  ;;  %v603_v36 = vpack.c.bf16 %v34_v28, %v33_v27 }
  0x18   :  { %626 = vmatprep.subr.bf16.mxu1 %v625_v4  ;;  %v132_v35 = vld [vmem:[%s1127_s1 + $0x388] sm:$0xff]  ;;  %v635_v37 = vpack.c.bf16 %v66_v31, %v65_v29  ;;  %v637_v38 = vpack.c.bf16 %v100_v33, %v99_v32  ;;  %v83_v39 = vld [vmem:[%s1127_s1 + $0x200] sm:$0xff]  ;;  %v101_v44 = vld [vmem:[%s1127_s1 + $0x290] sm:$0xff] }
  0x19   :  { %v84_v40 = vld [vmem:[%s1127_s1 + $0x208] sm:$0xff]  ;;  %v115_v41 = vld [vmem:[%s1127_s1 + $0x300] sm:$0xff]  ;;  %v669_v42 = vpack.c.bf16 %v132_v35, %v131_v34  ;;  %v102_v45 = vld [vmem:[%s1127_s1 + $0x298] sm:$0xff] }
  0x1a   :  { %596 = vmatpush3.bf16.msra.mxu0 %v595_v10  ;;  %v116_v43 = vld [vmem:[%s1127_s1 + $0x308] sm:$0xff]  ;;  %v133_v46 = vld [vmem:[%s1127_s1 + $0x390] sm:$0xff]  ;;  %v134_v47 = vld [vmem:[%s1127_s1 + $0x398] sm:$0xff]  ;;  %v639_v50 = vpack.c.bf16 %v84_v40, %v83_v39  ;;  %v641_v52 = vpack.c.bf16 %v102_v45, %v101_v44 }
  0x1b   :  { %628 = vmatpush3.bf16.msra.mxu1 %v627_v13  ;;  %598 = vmatprep.subr.bf16.mxu0 %v597_v14  ;;  %v11_v48 = vld [vmem:[%s1128_s0] sm:$0xff]  ;;  %v13_v49 = vld [vmem:[%s1128_s0 + $0x10] sm:$0xff]  ;;  %v671_v51 = vpack.c.bf16 %v116_v43, %v115_v41  ;;  %v86_v54 = vld [vmem:[%s1127_s1 + $0x218] sm:$0xff]  ;;  %v673_v56 = vpack.c.bf16 %v134_v47, %v133_v46 }
  0x1c   :  { %630 = vmatprep.subr.bf16.mxu1 %v629_v18  ;;  %v85_v53 = vld [vmem:[%s1127_s1 + $0x210] sm:$0xff]  ;;  %v118_v57 = vld [vmem:[%s1127_s1 + $0x318] sm:$0xff]  ;;  %v103_v58 = vld [vmem:[%s1127_s1 + $0x2a0] sm:$0xff] }
  0x1d   :  { %v117_v55 = vld [vmem:[%s1127_s1 + $0x310] sm:$0xff]  ;;  %v104_v59 = vld [vmem:[%s1127_s1 + $0x2a8] sm:$0xff]  ;;  %v135_v60 = vld [vmem:[%s1127_s1 + $0x3a0] sm:$0xff]  ;;  %v643_v62 = vpack.c.bf16 %v86_v54, %v85_v53 }
  0x1e   :  { %600 = vmatpush3.bf16.msra.mxu0 %v599_v24  ;;  %v136_v61 = vld [vmem:[%s1127_s1 + $0x3a8] sm:$0xff]  ;;  %v675_v63 = vpack.c.bf16 %v118_v57, %v117_v55  ;;  %v645_v0 = vpack.c.bf16 %v104_v59, %v103_v58  ;;  %v87_v1 = vld [vmem:[%s1127_s1 + $0x220] sm:$0xff]  ;;  %v105_v6 = vld [vmem:[%s1127_s1 + $0x2b0] sm:$0xff] }
  0x1f   :  { %632 = vmatpush3.bf16.msra.mxu1 %v631_v25  ;;  %602 = vmatprep.subr.bf16.mxu0 %v601_v26  ;;  %v88_v2 = vld [vmem:[%s1127_s1 + $0x228] sm:$0xff]  ;;  %v119_v3 = vld [vmem:[%s1127_s1 + $0x320] sm:$0xff]  ;;  %v677_v4 = vpack.c.bf16 %v136_v61, %v135_v60  ;;  %v106_v7 = vld [vmem:[%s1127_s1 + $0x2b8] sm:$0xff] }
  0x20   :  { %634 = vmatprep.subr.bf16.mxu1 %v633_v30  ;;  %v120_v5 = vld [vmem:[%s1127_s1 + $0x328] sm:$0xff]  ;;  %v137_v8 = vld [vmem:[%s1127_s1 + $0x3b0] sm:$0xff]  ;;  %v138_v9 = vld [vmem:[%s1127_s1 + $0x3b8] sm:$0xff]  ;;  %v647_v10 = vpack.c.bf16 %v88_v2, %v87_v1  ;;  %v649_v12 = vpack.c.bf16 %v106_v7, %v105_v6 }
  0x21   :  { %v679_v11 = vpack.c.bf16 %v120_v5, %v119_v3  ;;  %v89_v13 = vld [vmem:[%s1127_s1 + $0x230] sm:$0xff]  ;;  %v90_v14 = vld [vmem:[%s1127_s1 + $0x238] sm:$0xff]  ;;  %v681_v16 = vpack.c.bf16 %v138_v9, %v137_v8  ;;  %v107_v18 = vld [vmem:[%s1127_s1 + $0x2c0] sm:$0xff] }
  0x22   :  { %604 = vmatpush3.bf16.msra.mxu0 %v603_v36  ;;  %v121_v15 = vld [vmem:[%s1127_s1 + $0x330] sm:$0xff]  ;;  %v122_v17 = vld [vmem:[%s1127_s1 + $0x338] sm:$0xff]  ;;  %v108_v19 = vld [vmem:[%s1127_s1 + $0x2c8] sm:$0xff]  ;;  %v651_v22 = vpack.c.bf16 %v90_v14, %v89_v13 }
  0x23   :  { %636 = vmatpush3.bf16.msra.mxu1 %v635_v37  ;;  %638 = vmatprep.subr.bf16.mxu0 %v637_v38  ;;  %v139_v20 = vld [vmem:[%s1127_s1 + $0x3c0] sm:$0xff]  ;;  %v140_v21 = vld [vmem:[%s1127_s1 + $0x3c8] sm:$0xff]  ;;  %v18_v24 = vld [vmem:[%s1128_s0 + $0x38] sm:$0xff]  ;;  %v683_v25 = vpack.c.bf16 %v122_v17, %v121_v15  ;;  %v653_v26 = vpack.c.bf16 %v108_v19, %v107_v18 }
  0x24   :  { %670 = vmatprep.subr.bf16.mxu1 %v669_v42  ;;  %v16_v23 = vld [vmem:[%s1128_s0 + $0x28] sm:$0xff]  ;;  %v91_v27 = vld [vmem:[%s1127_s1 + $0x240] sm:$0xff]  ;;  %v685_v30 = vpack.c.bf16 %v140_v21, %v139_v20  ;;  %v109_v32 = vld [vmem:[%s1127_s1 + $0x2d0] sm:$0xff] }
  0x25   :  { %212 = vmatmul.mubr.f32.vlgmr.msra.gmra.mrb[0].mxu0 %v11_v48  ;;  %v92_v28 = vld [vmem:[%s1127_s1 + $0x248] sm:$0xff]  ;;  %v123_v29 = vld [vmem:[%s1127_s1 + $0x340] sm:$0xff]  ;;  %v110_v33 = vld [vmem:[%s1127_s1 + $0x2d8] sm:$0xff] }
  0x26   :  { %282 = vmatmul.mubr.f32.vlgmr.msra.gmra.mrb[0].mxu1 %v13_v49  ;;  %640 = vmatpush3.bf16.msra.mxu0 %v639_v50  ;;  %v124_v31 = vld [vmem:[%s1127_s1 + $0x348] sm:$0xff]  ;;  %v141_v34 = vld [vmem:[%s1127_s1 + $0x3d0] sm:$0xff]  ;;  %v142_v35 = vld [vmem:[%s1127_s1 + $0x3d8] sm:$0xff]  ;;  %v655_v36 = vpack.c.bf16 %v92_v28, %v91_v27  ;;  %v657_v38 = vpack.c.bf16 %v110_v33, %v109_v32 }
  0x27   :  { %672 = vmatpush3.bf16.msra.mxu1 %v671_v51  ;;  %642 = vmatprep.subr.bf16.mxu0 %v641_v52  ;;  %v687_v37 = vpack.c.bf16 %v124_v31, %v123_v29  ;;  %v93_v39 = vld [vmem:[%s1127_s1 + $0x250] sm:$0xff]  ;;  %v94_v40 = vld [vmem:[%s1127_s1 + $0x258] sm:$0xff]  ;;  %v689_v42 = vpack.c.bf16 %v142_v35, %v141_v34  ;;  %v111_v44 = vld [vmem:[%s1127_s1 + $0x2e0] sm:$0xff] }
  0x28   :  { %674 = vmatprep.subr.bf16.mxu1 %v673_v56  ;;  %351 = vmatprep.mubr.f32.mxu0 %v16_v23  ;;  %v125_v41 = vld [vmem:[%s1127_s1 + $0x350] sm:$0xff]  ;;  %v126_v43 = vld [vmem:[%s1127_s1 + $0x358] sm:$0xff]  ;;  %v112_v45 = vld [vmem:[%s1127_s1 + $0x2e8] sm:$0xff]  ;;  %v659_v48 = vpack.c.bf16 %v94_v40, %v93_v39 }
  0x29   :  { %421 = vmatprep.mubr.f32.mxu1 %v18_v24  ;;  %v143_v46 = vld [vmem:[%s1127_s1 + $0x3e0] sm:$0xff]  ;;  %v144_v47 = vld [vmem:[%s1127_s1 + $0x3e8] sm:$0xff]  ;;  %v691_v49 = vpack.c.bf16 %v126_v43, %v125_v41  ;;  %v661_v50 = vpack.c.bf16 %v112_v45, %v111_v44  ;;  %v113_v56 = vld [vmem:[%s1127_s1 + $0x2f0] sm:$0xff] }
  0x2a   :  { %644 = vmatpush3.bf16.msra.mxu0 %v643_v62  ;;  %v95_v51 = vld [vmem:[%s1127_s1 + $0x260] sm:$0xff]  ;;  %v96_v52 = vld [vmem:[%s1127_s1 + $0x268] sm:$0xff]  ;;  %v693_v54 = vpack.c.bf16 %v144_v47, %v143_v46  ;;  %v114_v57 = vld [vmem:[%s1127_s1 + $0x2f8] sm:$0xff] }
  0x2b   :  { %676 = vmatpush3.bf16.msra.mxu1 %v675_v63  ;;  %646 = vmatprep.subr.bf16.mxu0 %v645_v0  ;;  %v127_v53 = vld [vmem:[%s1127_s1 + $0x360] sm:$0xff]  ;;  %v128_v55 = vld [vmem:[%s1127_s1 + $0x368] sm:$0xff]  ;;  %v145_v58 = vld [vmem:[%s1127_s1 + $0x3f0] sm:$0xff]  ;;  %v663_v60 = vpack.c.bf16 %v96_v52, %v95_v51  ;;  %v665_v62 = vpack.c.bf16 %v114_v57, %v113_v56 }
  0x2c   :  { %678 = vmatprep.subr.bf16.mxu1 %v677_v4  ;;  %v146_v59 = vld [vmem:[%s1127_s1 + $0x3f8] sm:$0xff]  ;;  %v695_v61 = vpack.c.bf16 %v128_v55, %v127_v53  ;;  %v97_v63 = vld [vmem:[%s1127_s1 + $0x270] sm:$0xff]  ;;  %v15_v6 = vld [vmem:[%s1128_s0 + $0x20] sm:$0xff] }
  0x2d   :  { %v98_v0 = vld [vmem:[%s1127_s1 + $0x278] sm:$0xff]  ;;  %v697_v1 = vpack.c.bf16 %v146_v59, %v145_v58  ;;  %v129_v2 = vld [vmem:[%s1127_s1 + $0x370] sm:$0xff] }
  0x2e   :  { %648 = vmatpush3.bf16.msra.mxu0 %v647_v10  ;;  %v130_v3 = vld [vmem:[%s1127_s1 + $0x378] sm:$0xff]  ;;  %v667_v4 = vpack.c.bf16 %v98_v0, %v97_v63  ;;  %v17_v7 = vld [vmem:[%s1128_s0 + $0x30] sm:$0xff] }
  0x2f   :  { %680 = vmatpush3.bf16.msra.mxu1 %v679_v11  ;;  %650 = vmatprep.subr.bf16.mxu0 %v649_v12  ;;  %v699_v5 = vpack.c.bf16 %v130_v3, %v129_v2 }
  0x30   :  { %682 = vmatprep.subr.bf16.mxu1 %v681_v16 }
  0x32   :  { %652 = vmatpush3.bf16.msra.mxu0 %v651_v22 }
  0x33   :  { %684 = vmatpush3.bf16.msra.mxu1 %v683_v25  ;;  %654 = vmatprep.subr.bf16.mxu0 %v653_v26 }
  0x34   :  { %686 = vmatprep.subr.bf16.mxu1 %v685_v30 }
  0x36   :  { %656 = vmatpush3.bf16.msra.mxu0 %v655_v36 }
  0x37   :  { %688 = vmatpush3.bf16.msra.mxu1 %v687_v37  ;;  %658 = vmatprep.subr.bf16.mxu0 %v657_v38 }
  0x38   :  { %690 = vmatprep.subr.bf16.mxu1 %v689_v42 }
  0x3a   :  { %660 = vmatpush3.bf16.msra.mxu0 %v659_v48 }
  0x3b   :  { %692 = vmatpush3.bf16.msra.mxu1 %v691_v49  ;;  %662 = vmatprep.subr.bf16.mxu0 %v661_v50 }
  0x3c   :  { %694 = vmatprep.subr.bf16.mxu1 %v693_v54 }
  0x3e   :  { %664 = vmatpush3.bf16.msra.mxu0 %v663_v60 }
  0x3f   :  { %696 = vmatpush3.bf16.msra.mxu1 %v695_v61  ;;  %666 = vmatprep.subr.bf16.mxu0 %v665_v62 }
  0x40   :  { %698 = vmatprep.subr.bf16.mxu1 %v697_v1 }
  0x42   :  { %668 = vmatpush3.bf16.msra.mxu0 %v667_v4 }
  0x43   :  { %700 = vmatpush3.bf16.msra.mxu1 %v699_v5 }
  0x45   :  { %352 = vmatmul.mubr.f32.vlgmr.msra.gmra.mrb[2].mxu0 %v15_v6 }
  0x46   :  { %422 = vmatmul.mubr.f32.vlgmr.msra.gmra.mrb[2].mxu1 %v17_v7 }
  0xf8   :  { %v465_v8 = vpop.f32.mrb[0].mxu0 }
  0xf9   :  { %v500_v9 = vpop.f32.mrb[0].mxu1  ;;  %v466_v10 = vpop.f32.mrb[1].mxu0 }
  0xfa   :  { %v467_v11 = vadd.f32 %v466_v10, %v465_v8  ;;  %v501_v12 = vpop.f32.mrb[1].mxu1 }
  0xfb   :  { %v502_v13 = vadd.f32 %v501_v12, %v500_v9 }
  0xfd   :  { %v284_v14 = vadd.f32 %v502_v13, %v467_v11 }
 0x118   :  { %v535_v15 = vpop.f32.mrb[2].mxu0 }
 0x119   :  { %v536_v16 = vpop.f32.mrb[3].mxu0  ;;  %v570_v17 = vpop.f32.mrb[2].mxu1 }
 0x11a   :  { %v537_v18 = vadd.f32 %v536_v16, %v535_v15  ;;  %v571_v19 = vpop.f32.mrb[3].mxu1 }
 0x11b   :  { %v572_v20 = vadd.f32 %v571_v19, %v570_v17 }
 0x11c   :  { %v354_v21 = vadd.f32 %v537_v18, %v284_v14 }
 0x11e   :  { %v424_v22 = vadd.f32 %v572_v20, %v354_v21 }
 0x120   :  { %428 = vst.msk [vmem:[%s1129_s2] sm:$0xff] %vm427_vm0, %v424_v22 }

</bundles_post_ra>
